<compile_context>
chip_gen: v6e
topology: v6e:2x2x1
jax: 0.10.0
libtpu: 0.0.40
codegen_flags: <defaults>
</compile_context>

<pallas_src>
import math
import functools

import jax
import jax.numpy as jnp
import numpy as np
from jax.experimental import pallas as pl
from jax.experimental.pallas import tpu as pltpu

EPS = 1e-5  # PyTorch nn.LayerNorm default


# ----------------------------------------------------------------------------------
# Fused kernel: all encoder layers + final LayerNorm, one batch-block per grid step
# ----------------------------------------------------------------------------------
def _layer_norm(x, gamma, beta):
    mu = jnp.mean(x, axis=-1, keepdims=True)
    var = jnp.mean((x - mu) ** 2, axis=-1, keepdims=True)
    return (x - mu) * jax.lax.rsqrt(var + EPS) * gamma + beta


def fused_encoder_kernel(x_ref, tau_ref, delta_ref,
                         wq_ref, bq_ref, wk_ref, bk_ref, wv_ref, bv_ref,
                         wo_ref, bo_ref,
                         g1_ref, be1_ref,
                         w1_ref, b1_ref, w2_ref, b2_ref,
                         g2_ref, be2_ref,
                         gf_ref, bf_ref,
                         o_ref, *, n_heads, n_layers, matmul_dtype):
    Bblk, L, D = x_ref.shape
    H = n_heads
    E = D // H
    N = Bblk * L
    BH = Bblk * H
    scale = 1.0 / math.sqrt(E)

    # Activation lives on-chip for the whole layer stack.  L is a multiple of 8 so
    # the (Bblk, L, D) -> (N, D) flatten stays a free view.
    xf = x_ref[...].astype(jnp.float32).reshape(N, D)

    # Hoisted once: scale folded into tau / delta (removes one (B,H,L,L) VPU
    # multiply per layer).
    tau_s = (tau_ref[...].astype(jnp.float32) * scale).reshape(Bblk, 1, 1, 1)
    delta_s = (delta_ref[...].astype(jnp.float32) * scale).reshape(Bblk, 1, 1, L)

    def mm(a, b):
        return jnp.dot(a.astype(matmul_dtype), b.astype(matmul_dtype),
                       preferred_element_type=jnp.float32)

    def to_heads(t):  # (N, D) -> (Bblk*H, L, E): heads become the batch dim
        return (t.reshape(Bblk, L, H, E)
                 .transpose(0, 2, 1, 3)
                 .reshape(BH, L, E))

    # n_layers is small & static -> Python unroll (weights indexed statically).
    # TODO(synk): for n_layers > ~4 switch to lax.fori_loop with dynamic
    # wq_ref[l] indexing to bound vreg live ranges / code size.
    for l in range(n_layers):
        wq, wk, wv, wo = wq_ref[l], wk_ref[l], wv_ref[l], wo_ref[l]   # (D, D)
        bq, bk, bv, bo = bq_ref[l], bk_ref[l], bv_ref[l], bo_ref[l]   # (1, D)

        # Q/K/V projections over the flattened (batch*seq) M-dim.
        q = mm(xf, wq) + bq
        k = mm(xf, wk) + bk
        v = mm(xf, wv) + bv

        qh, kh, vh = to_heads(q), to_heads(k), to_heads(v)

        # ONE batched matmul over the (Bblk*H) batch axis for the scores
        # (no per-head loop, no E-wide lane slicing).
        s = jnp.einsum('ble,bse->bls',
                       qh.astype(matmul_dtype), kh.astype(matmul_dtype),
                       preferred_element_type=jnp.float32)            # (BH, L, L)
        s4 = s.reshape(Bblk, H, L, L) * tau_s + delta_s
        s4 = s4 - jnp.max(s4, axis=-1, keepdims=True)
        p = jnp.exp(s4)
        a = p * pl.reciprocal(jnp.sum(p, axis=-1, keepdims=True), approx=True)

        # ONE batched matmul for A @ V as well.
        av = jnp.einsum('bls,bse->ble',
                        a.reshape(BH, L, L).astype(matmul_dtype),
                        vh.astype(matmul_dtype),
                        preferred_element_type=jnp.float32)           # (BH, L, E)

        # Merge heads (contiguous along D) and do a single K=D output projection.
        av = av.reshape(Bblk, H, L, E).transpose(0, 2, 1, 3).reshape(N, D)
        new_x = mm(av, wo) + bo

        # residual + norm1
        xn = _layer_norm(xf + new_x, g1_ref[l], be1_ref[l])

        # FFN (conv1d kernel_size=1 pair == two Linears over the channel dim)
        y = jnp.maximum(mm(xn, w1_ref[l]) + b1_ref[l], 0.0)
        y = mm(y, w2_ref[l]) + b2_ref[l]

        # residual + norm2
        xf = _layer_norm(xn + y, g2_ref[l], be2_ref[l])

    # Final Encoder LayerNorm, fused into the same kernel.
    out = _layer_norm(xf, gf_ref[...], bf_ref[...])
    # For production D >= 128 this store is already lane-dense; with toy D < 128
    # the masked store is negligible at these sizes.
    o_ref[...] = out.reshape(Bblk, L, D).astype(o_ref.dtype)


# ----------------------------------------------------------------------------------
# Wrapper: one pallas_call for the whole encoder
# ----------------------------------------------------------------------------------
def encoder_forward(x, layer_params, norm_params, tau, delta, n_heads,
                    *, matmul_dtype=jnp.float32, weights_dtype=None,
                    b_blk=None, max_block_rows=512, weight_buffer_count=None):
    """Encoder.forward with conv_layers=None: all attn layers + final norm fused.

    weights_dtype:        cast the matmul weight matrices (wq/wk/wv/wo/w1/w2) in the
                          wrapper (bf16 recommended on v6e/v7x at prod sizes).
    max_block_rows:       cap on b_blk*L (raise to 1024-2048 on v5e/v6e's 128 MiB).
    weight_buffer_count:  set to 1 on v7x to stop double-buffering the grid-invariant
                          weight stack (halves resident weight VMEM).
    """
    B, L, D = x.shape
    n_layers = len(layer_params)
    assert D % n_heads == 0
    assert L % 8 == 0, "keep L a multiple of 8 so in-kernel reshapes stay free views"

    if weights_dtype is None and matmul_dtype != jnp.float32:
        weights_dtype = matmul_dtype

    # Stack per-layer weights on a leading layer axis -> single pallas_call,
    # weights DMA'd once and kept VMEM-resident across the layer loop.
    matmul_weight_names = {"wq", "wk", "wv", "wo", "w1", "w2"}
    param_order = ["wq", "bq", "wk", "bk", "wv", "bv", "wo", "bo",
                   "g1", "be1", "w1", "b1", "w2", "b2", "g2", "be2"]

    def maybe_cast(name, arr):
        if weights_dtype is not None and name in matmul_weight_names:
            return arr.astype(weights_dtype)
        return arr

    stacked = {name: jnp.stack([maybe_cast(name, p[name]) for p in layer_params],
                               axis=0)
               for name in param_order}

    # Pack batch elements into one block so the matmul M-dim (= b_blk * L) is large,
    # but keep >= 2 grid steps (when B >= 2) so the "parallel" axis can shard across
    # v7x's two TensorCores.
    if b_blk is None:
        b_blk = 1
        min_steps = min(2, B)
        for d in range(1, B + 1):
            if B % d == 0 and d * L <= max_block_rows and (B // d) >= min_steps:
                b_blk = d
    assert B % b_blk == 0, f"b_blk={b_blk} must divide B={B}"
    grid = (B // b_blk,)

    def batch_spec(shape):
        nd = len(shape)
        return pl.BlockSpec((b_blk,) + tuple(shape[1:]),
                            lambda g, _nd=nd: (g,) + (0,) * (_nd - 1))

    def full_spec(shape):
        nd = len(shape)
        if weight_buffer_count is not None:
            return pl.BlockSpec(tuple(shape), lambda g, _nd=nd: (0,) * _nd,
                                pipeline_mode=pl.Buffered(weight_buffer_count))
        return pl.BlockSpec(tuple(shape), lambda g, _nd=nd: (0,) * _nd)

    in_specs = [batch_spec(x.shape), batch_spec(tau.shape), batch_spec(delta.shape)]
    args = [x, tau, delta]
    for name in param_order:
        arr = stacked[name]
        in_specs.append(full_spec(arr.shape))
        args.append(arr)
    in_specs += [full_spec(norm_params["gamma"].shape),
                 full_spec(norm_params["beta"].shape)]
    args += [norm_params["gamma"], norm_params["beta"]]

    # Explicit scoped-VMEM budget: resident weight stack (x2 for buffering) plus the
    # per-step activation working set.  Clamped to 64 MiB so it is portable to v7x.
    d_ff = stacked["w1"].shape[-1]

    def _nbytes(a):
        return int(a.size) * a.dtype.itemsize

    weight_bytes = (sum(_nbytes(v) for v in stacked.values())
                    + _nbytes(norm_params["gamma"]) + _nbytes(norm_params["beta"]))
    act_bytes = 4 * (b_blk * L * (6 * D + 2 * d_ff)
                     + 3 * b_blk * n_heads * L * L)
    io_bytes = 4 * (2 * b_blk * L * D + b_blk * (1 + L))
    vmem_limit = int(min(max(2 * weight_bytes + 4 * act_bytes + 2 * io_bytes
                             + (4 << 20), 32 << 20), 64 << 20))

    out = pl.pallas_call(
        functools.partial(fused_encoder_kernel, n_heads=n_heads,
                          n_layers=n_layers, matmul_dtype=matmul_dtype),
        out_shape=jax.ShapeDtypeStruct((B, L, D), x.dtype),
        grid=grid,
        in_specs=in_specs,
        out_specs=pl.BlockSpec((b_blk, L, D), lambda g: (g, 0, 0)),
        compiler_params=pltpu.CompilerParams(
            dimension_semantics=("parallel",),   # batch blocks are independent
            vmem_limit_bytes=vmem_limit),
    )(*args)

    attns = [None] * n_layers   # DSAttention(output_attention=False) returns None
    return out, attns


# ----------------------------------------------------------------------------------
# Pure-JAX reference (mirrors the PyTorch module exactly) for verification
# ----------------------------------------------------------------------------------
def ref_encoder(x, layer_params, norm_params, tau, delta, n_heads):
    B, L, D = x.shape
    E = D // n_heads
    scale = 1.0 / math.sqrt(E)
    tau_b = tau.reshape(B, 1, 1, 1)
    delta_b = delta.reshape(B, 1, 1, L)
    for p in layer_params:
        q = (x @ p["wq"] + p["bq"][0]).reshape(B, L, n_heads, E)
        k = (x @ p["wk"] + p["bk"][0]).reshape(B, L, n_heads, E)
        v = (x @ p["wv"] + p["bv"][0]).reshape(B, L, n_heads, E)
        scores = jnp.einsum("blhe,bshe->bhls", q, k) * tau_b + delta_b
        a = jax.nn.softmax(scale * scores, axis=-1)
        o = jnp.einsum("bhls,bshd->blhd", a, v).reshape(B, L, D)
        new_x = o @ p["wo"] + p["bo"][0]
        x1 = x + new_x
        mu = jnp.mean(x1, -1, keepdims=True)
        var = jnp.mean((x1 - mu) ** 2, -1, keepdims=True)
        xn = (x1 - mu) / jnp.sqrt(var + EPS) * p["g1"][0] + p["be1"][0]
        y = jnp.maximum(xn @ p["w1"] + p["b1"][0], 0.0)
        y = y @ p["w2"] + p["b2"][0]
        x2 = xn + y
        mu2 = jnp.mean(x2, -1, keepdims=True)
        var2 = jnp.mean((x2 - mu2) ** 2, -1, keepdims=True)
        x = (x2 - mu2) / jnp.sqrt(var2 + EPS) * p["g2"][0] + p["be2"][0]
    mu = jnp.mean(x, -1, keepdims=True)
    var = jnp.mean((x - mu) ** 2, -1, keepdims=True)
    return (x - mu) / jnp.sqrt(var + EPS) * norm_params["gamma"][0] + norm_params["beta"][0]


# ----------------------------------------------------------------------------------
# Main
# ----------------------------------------------------------------------------------
if __name__ == "__main__":
    B, L, D, H, D_FF, N_LAYERS = 2, 8, 32, 4, 64, 2

    key = jax.random.PRNGKey(0)

    def init_layer(k):
        ks = jax.random.split(k, 12)
        s = 0.1
        return {
            "wq": jax.random.normal(ks[0], (D, D), jnp.float32) * s,
            "bq": jax.random.normal(ks[1], (1, D), jnp.float32) * s,
            "wk": jax.random.normal(ks[2], (D, D), jnp.float32) * s,
            "bk": jax.random.normal(ks[3], (1, D), jnp.float32) * s,
            "wv": jax.random.normal(ks[4], (D, D), jnp.float32) * s,
            "bv": jax.random.normal(ks[5], (1, D), jnp.float32) * s,
            "wo": jax.random.normal(ks[6], (D, D), jnp.float32) * s,
            "bo": jax.random.normal(ks[7], (1, D), jnp.float32) * s,
            "g1": jnp.ones((1, D), jnp.float32),
            "be1": jnp.zeros((1, D), jnp.float32),
            "w1": jax.random.normal(ks[8], (D, D_FF), jnp.float32) * s,
            "b1": jax.random.normal(ks[9], (1, D_FF), jnp.float32) * s,
            "w2": jax.random.normal(ks[10], (D_FF, D), jnp.float32) * s,
            "b2": jax.random.normal(ks[11], (1, D), jnp.float32) * s,
            "g2": jnp.ones((1, D), jnp.float32),
            "be2": jnp.zeros((1, D), jnp.float32),
        }

    key, *lkeys = jax.random.split(key, N_LAYERS + 1)
    layer_params = [init_layer(k) for k in lkeys]
    norm_params = {"gamma": jnp.ones((1, D), jnp.float32),
                   "beta": jnp.zeros((1, D), jnp.float32)}

    key, kx, kt, kd = jax.random.split(key, 4)
    x = jax.random.normal(kx, (B, L, D), jnp.float32)
    # tau from the nonstationary projector is exp(...), i.e. positive; delta is per-key bias
    tau = jnp.exp(0.1 * jax.random.normal(kt, (B, 1, 1), jnp.float32))
    delta = 0.1 * jax.random.normal(kd, (B, 1, L), jnp.float32)

    # matmul_dtype=jnp.bfloat16 (weights auto-cast) is recommended on v6e/v7x at
    # production d_model/d_ff; kept f32 here so the small-shape check stays tight.
    out, attns = encoder_forward(x, layer_params, norm_params, tau, delta, H,
                                 matmul_dtype=jnp.float32)
    out = jax.block_until_ready(out)

    ref = ref_encoder(x, layer_params, norm_params, tau, delta, H)
    # Tolerance loosened slightly vs 1e-4 only because softmax normalization uses the
    # EUP approximate reciprocal (pl.reciprocal(approx=True)).
    np.testing.assert_allclose(np.asarray(out), np.asarray(ref), rtol=2e-3, atol=2e-3)
    assert all(a is None for a in attns)  # output_attention=False -> attn is None

    print("KERNEL_OK")
</pallas_src>

<mosaic_0001>
module attributes {stable_mosaic.version = 11 : i64} {
  func.func @fused_encoder_kernel(%arg0: i32, %arg1: memref<1x8x32xf32, #tpu.memory_space<vmem>>, %arg2: memref<1x1x1xf32, #tpu.memory_space<vmem>>, %arg3: memref<1x1x8xf32, #tpu.memory_space<vmem>>, %arg4: memref<2x32x32xf32, #tpu.memory_space<vmem>>, %arg5: memref<2x1x32xf32, #tpu.memory_space<vmem>>, %arg6: memref<2x32x32xf32, #tpu.memory_space<vmem>>, %arg7: memref<2x1x32xf32, #tpu.memory_space<vmem>>, %arg8: memref<2x32x32xf32, #tpu.memory_space<vmem>>, %arg9: memref<2x1x32xf32, #tpu.memory_space<vmem>>, %arg10: memref<2x32x32xf32, #tpu.memory_space<vmem>>, %arg11: memref<2x1x32xf32, #tpu.memory_space<vmem>>, %arg12: memref<2x1x32xf32, #tpu.memory_space<vmem>>, %arg13: memref<2x1x32xf32, #tpu.memory_space<vmem>>, %arg14: memref<2x32x64xf32, #tpu.memory_space<vmem>>, %arg15: memref<2x1x64xf32, #tpu.memory_space<vmem>>, %arg16: memref<2x64x32xf32, #tpu.memory_space<vmem>>, %arg17: memref<2x1x32xf32, #tpu.memory_space<vmem>>, %arg18: memref<2x1x32xf32, #tpu.memory_space<vmem>>, %arg19: memref<2x1x32xf32, #tpu.memory_space<vmem>>, %arg20: memref<1x32xf32, #tpu.memory_space<vmem>>, %arg21: memref<1x32xf32, #tpu.memory_space<vmem>>, %arg22: memref<1x8x32xf32, #tpu.memory_space<vmem>>) attributes {dimension_semantics = [#tpu.dimension_semantics<parallel>], iteration_bounds = array<i64: 2>, scalar_prefetch = 0 : i64, scratch_operands = 0 : i64, tpu.core_type = #tpu.core_type<tc>, window_params = [{transform_indices = @transform_0, window_bounds = array<i64: 1, 8, 32>}, {transform_indices = @transform_1, window_bounds = array<i64: 1, 1, 1>}, {transform_indices = @transform_2, window_bounds = array<i64: 1, 1, 8>}, {pipeline_mode = #tpu.pipeline_mode<synchronous>, transform_indices = @transform_3, window_bounds = array<i64: 2, 32, 32>}, {pipeline_mode = #tpu.pipeline_mode<synchronous>, transform_indices = @transform_4, window_bounds = array<i64: 2, 1, 32>}, {pipeline_mode = #tpu.pipeline_mode<synchronous>, transform_indices = @transform_5, window_bounds = array<i64: 2, 32, 32>}, {pipeline_mode = #tpu.pipeline_mode<synchronous>, transform_indices = @transform_6, window_bounds = array<i64: 2, 1, 32>}, {pipeline_mode = #tpu.pipeline_mode<synchronous>, transform_indices = @transform_7, window_bounds = array<i64: 2, 32, 32>}, {pipeline_mode = #tpu.pipeline_mode<synchronous>, transform_indices = @transform_8, window_bounds = array<i64: 2, 1, 32>}, {pipeline_mode = #tpu.pipeline_mode<synchronous>, transform_indices = @transform_9, window_bounds = array<i64: 2, 32, 32>}, {pipeline_mode = #tpu.pipeline_mode<synchronous>, transform_indices = @transform_10, window_bounds = array<i64: 2, 1, 32>}, {pipeline_mode = #tpu.pipeline_mode<synchronous>, transform_indices = @transform_11, window_bounds = array<i64: 2, 1, 32>}, {pipeline_mode = #tpu.pipeline_mode<synchronous>, transform_indices = @transform_12, window_bounds = array<i64: 2, 1, 32>}, {pipeline_mode = #tpu.pipeline_mode<synchronous>, transform_indices = @transform_13, window_bounds = array<i64: 2, 32, 64>}, {pipeline_mode = #tpu.pipeline_mode<synchronous>, transform_indices = @transform_14, window_bounds = array<i64: 2, 1, 64>}, {pipeline_mode = #tpu.pipeline_mode<synchronous>, transform_indices = @transform_15, window_bounds = array<i64: 2, 64, 32>}, {pipeline_mode = #tpu.pipeline_mode<synchronous>, transform_indices = @transform_16, window_bounds = array<i64: 2, 1, 32>}, {pipeline_mode = #tpu.pipeline_mode<synchronous>, transform_indices = @transform_17, window_bounds = array<i64: 2, 1, 32>}, {pipeline_mode = #tpu.pipeline_mode<synchronous>, transform_indices = @transform_18, window_bounds = array<i64: 2, 1, 32>}, {pipeline_mode = #tpu.pipeline_mode<synchronous>, transform_indices = @transform_19, window_bounds = array<i64: 1, 32>}, {pipeline_mode = #tpu.pipeline_mode<synchronous>, transform_indices = @transform_20, window_bounds = array<i64: 1, 32>}, {transform_indices = @transform_21, window_bounds = array<i64: 1, 8, 32>}]} {
    %c0 = arith.constant 0 : index
    %c0_0 = arith.constant 0 : index
    %c0_1 = arith.constant 0 : index
    %0 = vector.load %arg1[%c0, %c0_0, %c0_1] : memref<1x8x32xf32, #tpu.memory_space<vmem>>, vector<1x8x32xf32>
    %1 = vector.shape_cast %0 : vector<1x8x32xf32> to vector<8x32xf32>
    %c0_2 = arith.constant 0 : index
    %c0_3 = arith.constant 0 : index
    %c0_4 = arith.constant 0 : index
    %2 = vector.load %arg2[%c0_2, %c0_3, %c0_4] : memref<1x1x1xf32, #tpu.memory_space<vmem>>, vector<1x1x1xf32>
    %cst = arith.constant 0.353553385 : f32
    %3 = vector.broadcast %cst : f32 to vector<1x1x1xf32>
    %4 = arith.mulf %2, %3 : vector<1x1x1xf32>
    %5 = vector.shape_cast %4 : vector<1x1x1xf32> to vector<1x1x1x1xf32>
    %c0_5 = arith.constant 0 : index
    %c0_6 = arith.constant 0 : index
    %c0_7 = arith.constant 0 : index
    %6 = vector.load %arg3[%c0_5, %c0_6, %c0_7] : memref<1x1x8xf32, #tpu.memory_space<vmem>>, vector<1x1x8xf32>
    %cst_8 = arith.constant 0.353553385 : f32
    %7 = vector.broadcast %cst_8 : f32 to vector<1x1x8xf32>
    %8 = arith.mulf %6, %7 : vector<1x1x8xf32>
    %9 = vector.shape_cast %8 : vector<1x1x8xf32> to vector<1x1x1x8xf32>
    %c0_9 = arith.constant 0 : index
    %c0_10 = arith.constant 0 : index
    %c0_11 = arith.constant 0 : index
    %10 = vector.load %arg4[%c0_9, %c0_10, %c0_11] : memref<2x32x32xf32, #tpu.memory_space<vmem>>, vector<1x32x32xf32>
    %11 = vector.shape_cast %10 : vector<1x32x32xf32> to vector<32x32xf32>
    %c0_12 = arith.constant 0 : index
    %c0_13 = arith.constant 0 : index
    %c0_14 = arith.constant 0 : index
    %12 = vector.load %arg6[%c0_12, %c0_13, %c0_14] : memref<2x32x32xf32, #tpu.memory_space<vmem>>, vector<1x32x32xf32>
    %13 = vector.shape_cast %12 : vector<1x32x32xf32> to vector<32x32xf32>
    %c0_15 = arith.constant 0 : index
    %c0_16 = arith.constant 0 : index
    %c0_17 = arith.constant 0 : index
    %14 = vector.load %arg8[%c0_15, %c0_16, %c0_17] : memref<2x32x32xf32, #tpu.memory_space<vmem>>, vector<1x32x32xf32>
    %15 = vector.shape_cast %14 : vector<1x32x32xf32> to vector<32x32xf32>
    %c0_18 = arith.constant 0 : index
    %c0_19 = arith.constant 0 : index
    %c0_20 = arith.constant 0 : index
    %16 = vector.load %arg10[%c0_18, %c0_19, %c0_20] : memref<2x32x32xf32, #tpu.memory_space<vmem>>, vector<1x32x32xf32>
    %17 = vector.shape_cast %16 : vector<1x32x32xf32> to vector<32x32xf32>
    %c0_21 = arith.constant 0 : index
    %c0_22 = arith.constant 0 : index
    %c0_23 = arith.constant 0 : index
    %18 = vector.load %arg5[%c0_21, %c0_22, %c0_23] : memref<2x1x32xf32, #tpu.memory_space<vmem>>, vector<1x1x32xf32>
    %19 = vector.shape_cast %18 : vector<1x1x32xf32> to vector<1x32xf32>
    %c0_24 = arith.constant 0 : index
    %c0_25 = arith.constant 0 : index
    %c0_26 = arith.constant 0 : index
    %20 = vector.load %arg7[%c0_24, %c0_25, %c0_26] : memref<2x1x32xf32, #tpu.memory_space<vmem>>, vector<1x1x32xf32>
    %21 = vector.shape_cast %20 : vector<1x1x32xf32> to vector<1x32xf32>
    %c0_27 = arith.constant 0 : index
    %c0_28 = arith.constant 0 : index
    %c0_29 = arith.constant 0 : index
    %22 = vector.load %arg9[%c0_27, %c0_28, %c0_29] : memref<2x1x32xf32, #tpu.memory_space<vmem>>, vector<1x1x32xf32>
    %23 = vector.shape_cast %22 : vector<1x1x32xf32> to vector<1x32xf32>
    %c0_30 = arith.constant 0 : index
    %c0_31 = arith.constant 0 : index
    %c0_32 = arith.constant 0 : index
    %24 = vector.load %arg11[%c0_30, %c0_31, %c0_32] : memref<2x1x32xf32, #tpu.memory_space<vmem>>, vector<1x1x32xf32>
    %25 = vector.shape_cast %24 : vector<1x1x32xf32> to vector<1x32xf32>
    %cst_33 = arith.constant dense<0.000000e+00> : vector<8x32xf32>
    %26 = tpu.matmul %1, %11, %cst_33 {dimension_numbers = #tpu.dot_dimension_numbers<[1], [0], [0], [1], [0, 0, 1, 1], [], []>} : vector<8x32xf32>, vector<32x32xf32>, vector<8x32xf32> -> vector<8x32xf32>
    %27 = vector.broadcast %19 : vector<1x32xf32> to vector<8x32xf32>
    %28 = arith.addf %26, %27 : vector<8x32xf32>
    %cst_34 = arith.constant dense<0.000000e+00> : vector<8x32xf32>
    %29 = tpu.matmul %1, %13, %cst_34 {dimension_numbers = #tpu.dot_dimension_numbers<[1], [0], [0], [1], [0, 0, 1, 1], [], []>} : vector<8x32xf32>, vector<32x32xf32>, vector<8x32xf32> -> vector<8x32xf32>
    %30 = vector.broadcast %21 : vector<1x32xf32> to vector<8x32xf32>
    %31 = arith.addf %29, %30 : vector<8x32xf32>
    %cst_35 = arith.constant dense<0.000000e+00> : vector<8x32xf32>
    %32 = tpu.matmul %1, %15, %cst_35 {dimension_numbers = #tpu.dot_dimension_numbers<[1], [0], [0], [1], [0, 0, 1, 1], [], []>} : vector<8x32xf32>, vector<32x32xf32>, vector<8x32xf32> -> vector<8x32xf32>
    %33 = vector.broadcast %23 : vector<1x32xf32> to vector<8x32xf32>
    %34 = arith.addf %32, %33 : vector<8x32xf32>
    %35 = vector.shape_cast %28 : vector<8x32xf32> to vector<1x8x4x8xf32>
    %36 = tpu.transpose %35, [0, 2, 1, 3] : vector<1x8x4x8xf32> -> vector<1x4x8x8xf32>
    %37 = vector.shape_cast %36 : vector<1x4x8x8xf32> to vector<4x8x8xf32>
    %38 = vector.shape_cast %31 : vector<8x32xf32> to vector<1x8x4x8xf32>
    %39 = tpu.transpose %38, [0, 2, 1, 3] : vector<1x8x4x8xf32> -> vector<1x4x8x8xf32>
    %40 = vector.shape_cast %39 : vector<1x4x8x8xf32> to vector<4x8x8xf32>
    %41 = vector.shape_cast %34 : vector<8x32xf32> to vector<1x8x4x8xf32>
    %42 = tpu.transpose %41, [0, 2, 1, 3] : vector<1x8x4x8xf32> -> vector<1x4x8x8xf32>
    %43 = vector.shape_cast %42 : vector<1x4x8x8xf32> to vector<4x8x8xf32>
    "tpu.trace_start"() <{level = 10 : i32, message = "ble,bse->bls"}> : () -> ()
    %cst_36 = arith.constant dense<0.000000e+00> : vector<4x8x8xf32>
    %44 = tpu.matmul %37, %40, %cst_36 {dimension_numbers = #tpu.dot_dimension_numbers<[2], [2], [1], [1], [0, 0, 0, 1, 1, 1], [0], [0]>} : vector<4x8x8xf32>, vector<4x8x8xf32>, vector<4x8x8xf32> -> vector<4x8x8xf32>
    "tpu.trace_stop"() : () -> ()
    %45 = vector.shape_cast %44 : vector<4x8x8xf32> to vector<1x4x8x8xf32>
    %46 = vector.broadcast %5 : vector<1x1x1x1xf32> to vector<1x4x8x8xf32>
    %47 = arith.mulf %45, %46 : vector<1x4x8x8xf32>
    %48 = vector.broadcast %9 : vector<1x1x1x8xf32> to vector<1x4x8x8xf32>
    %49 = arith.addf %47, %48 : vector<1x4x8x8xf32>
    %cst_37 = arith.constant dense<0xFF800000> : vector<1x4x8xf32>
    %50 = vector.multi_reduction <maximumf>, %49, %cst_37 [3] : vector<1x4x8x8xf32> to vector<1x4x8xf32>
    %51 = vector.shape_cast %50 : vector<1x4x8xf32> to vector<1x4x8x1xf32>
    %52 = vector.broadcast %51 : vector<1x4x8x1xf32> to vector<1x4x8x8xf32>
    %53 = arith.subf %49, %52 : vector<1x4x8x8xf32>
    %54 = math.exp %53 : vector<1x4x8x8xf32>
    %cst_38 = arith.constant dense<0.000000e+00> : vector<1x4x8xf32>
    %55 = vector.multi_reduction <add>, %54, %cst_38 [3] : vector<1x4x8x8xf32> to vector<1x4x8xf32>
    %56 = vector.shape_cast %55 : vector<1x4x8xf32> to vector<1x4x8x1xf32>
    %57 = tpu.reciprocal %56 {approx = true} : vector<1x4x8x1xf32> -> vector<1x4x8x1xf32>
    %58 = vector.broadcast %57 : vector<1x4x8x1xf32> to vector<1x4x8x8xf32>
    %59 = arith.mulf %54, %58 : vector<1x4x8x8xf32>
    %60 = vector.shape_cast %59 : vector<1x4x8x8xf32> to vector<4x8x8xf32>
    "tpu.trace_start"() <{level = 10 : i32, message = "bls,bse->ble"}> : () -> ()
    %cst_39 = arith.constant dense<0.000000e+00> : vector<4x8x8xf32>
    %61 = tpu.matmul %60, %43, %cst_39 {dimension_numbers = #tpu.dot_dimension_numbers<[2], [1], [1], [2], [0, 0, 0, 1, 1, 2], [0], [0]>} : vector<4x8x8xf32>, vector<4x8x8xf32>, vector<4x8x8xf32> -> vector<4x8x8xf32>
    "tpu.trace_stop"() : () -> ()
    %62 = vector.shape_cast %61 : vector<4x8x8xf32> to vector<1x4x8x8xf32>
    %63 = tpu.transpose %62, [0, 2, 1, 3] : vector<1x4x8x8xf32> -> vector<1x8x4x8xf32>
    %64 = vector.shape_cast %63 : vector<1x8x4x8xf32> to vector<8x32xf32>
    %cst_40 = arith.constant dense<0.000000e+00> : vector<8x32xf32>
    %65 = tpu.matmul %64, %17, %cst_40 {dimension_numbers = #tpu.dot_dimension_numbers<[1], [0], [0], [1], [0, 0, 1, 1], [], []>} : vector<8x32xf32>, vector<32x32xf32>, vector<8x32xf32> -> vector<8x32xf32>
    %66 = vector.broadcast %25 : vector<1x32xf32> to vector<8x32xf32>
    %67 = arith.addf %65, %66 : vector<8x32xf32>
    %68 = arith.addf %1, %67 : vector<8x32xf32>
    %c0_41 = arith.constant 0 : index
    %c0_42 = arith.constant 0 : index
    %c0_43 = arith.constant 0 : index
    %69 = vector.load %arg12[%c0_41, %c0_42, %c0_43] : memref<2x1x32xf32, #tpu.memory_space<vmem>>, vector<1x1x32xf32>
    %70 = vector.shape_cast %69 : vector<1x1x32xf32> to vector<1x32xf32>
    %c0_44 = arith.constant 0 : index
    %c0_45 = arith.constant 0 : index
    %c0_46 = arith.constant 0 : index
    %71 = vector.load %arg13[%c0_44, %c0_45, %c0_46] : memref<2x1x32xf32, #tpu.memory_space<vmem>>, vector<1x1x32xf32>
    %72 = vector.shape_cast %71 : vector<1x1x32xf32> to vector<1x32xf32>
    %cst_47 = arith.constant dense<0.000000e+00> : vector<8xf32>
    %73 = vector.multi_reduction <add>, %68, %cst_47 [1] : vector<8x32xf32> to vector<8xf32>
    %74 = vector.shape_cast %73 : vector<8xf32> to vector<8x1xf32>
    %cst_48 = arith.constant 3.200000e+01 : f32
    %75 = vector.broadcast %cst_48 : f32 to vector<8x1xf32>
    %76 = arith.divf %74, %75 : vector<8x1xf32>
    %77 = vector.broadcast %76 : vector<8x1xf32> to vector<8x32xf32>
    %78 = arith.subf %68, %77 : vector<8x32xf32>
    %79 = arith.mulf %78, %78 : vector<8x32xf32>
    %cst_49 = arith.constant dense<0.000000e+00> : vector<8xf32>
    %80 = vector.multi_reduction <add>, %79, %cst_49 [1] : vector<8x32xf32> to vector<8xf32>
    %81 = vector.shape_cast %80 : vector<8xf32> to vector<8x1xf32>
    %cst_50 = arith.constant 3.200000e+01 : f32
    %82 = vector.broadcast %cst_50 : f32 to vector<8x1xf32>
    %83 = arith.divf %81, %82 : vector<8x1xf32>
    %84 = vector.broadcast %76 : vector<8x1xf32> to vector<8x32xf32>
    %85 = arith.subf %68, %84 : vector<8x32xf32>
    %cst_51 = arith.constant 9.99999974E-6 : f32
    %86 = vector.broadcast %cst_51 : f32 to vector<8x1xf32>
    %87 = arith.addf %83, %86 : vector<8x1xf32>
    %88 = math.rsqrt %87 : vector<8x1xf32>
    %89 = vector.broadcast %88 : vector<8x1xf32> to vector<8x32xf32>
    %90 = arith.mulf %85, %89 : vector<8x32xf32>
    %91 = vector.broadcast %70 : vector<1x32xf32> to vector<8x32xf32>
    %92 = arith.mulf %90, %91 : vector<8x32xf32>
    %93 = vector.broadcast %72 : vector<1x32xf32> to vector<8x32xf32>
    %94 = arith.addf %92, %93 : vector<8x32xf32>
    %c0_52 = arith.constant 0 : index
    %c0_53 = arith.constant 0 : index
    %c0_54 = arith.constant 0 : index
    %95 = vector.load %arg14[%c0_52, %c0_53, %c0_54] : memref<2x32x64xf32, #tpu.memory_space<vmem>>, vector<1x32x64xf32>
    %96 = vector.shape_cast %95 : vector<1x32x64xf32> to vector<32x64xf32>
    %cst_55 = arith.constant dense<0.000000e+00> : vector<8x64xf32>
    %97 = tpu.matmul %94, %96, %cst_55 {dimension_numbers = #tpu.dot_dimension_numbers<[1], [0], [0], [1], [0, 0, 1, 1], [], []>} : vector<8x32xf32>, vector<32x64xf32>, vector<8x64xf32> -> vector<8x64xf32>
    %c0_56 = arith.constant 0 : index
    %c0_57 = arith.constant 0 : index
    %c0_58 = arith.constant 0 : index
    %98 = vector.load %arg15[%c0_56, %c0_57, %c0_58] : memref<2x1x64xf32, #tpu.memory_space<vmem>>, vector<1x1x64xf32>
    %99 = vector.shape_cast %98 : vector<1x1x64xf32> to vector<1x64xf32>
    %100 = vector.broadcast %99 : vector<1x64xf32> to vector<8x64xf32>
    %101 = arith.addf %97, %100 : vector<8x64xf32>
    %cst_59 = arith.constant 0.000000e+00 : f32
    %102 = vector.broadcast %cst_59 : f32 to vector<8x64xf32>
    %103 = arith.maximumf %101, %102 : vector<8x64xf32>
    %c0_60 = arith.constant 0 : index
    %c0_61 = arith.constant 0 : index
    %c0_62 = arith.constant 0 : index
    %104 = vector.load %arg16[%c0_60, %c0_61, %c0_62] : memref<2x64x32xf32, #tpu.memory_space<vmem>>, vector<1x64x32xf32>
    %105 = vector.shape_cast %104 : vector<1x64x32xf32> to vector<64x32xf32>
    %cst_63 = arith.constant dense<0.000000e+00> : vector<8x32xf32>
    %106 = tpu.matmul %103, %105, %cst_63 {dimension_numbers = #tpu.dot_dimension_numbers<[1], [0], [0], [1], [0, 0, 1, 1], [], []>} : vector<8x64xf32>, vector<64x32xf32>, vector<8x32xf32> -> vector<8x32xf32>
    %c0_64 = arith.constant 0 : index
    %c0_65 = arith.constant 0 : index
    %c0_66 = arith.constant 0 : index
    %107 = vector.load %arg17[%c0_64, %c0_65, %c0_66] : memref<2x1x32xf32, #tpu.memory_space<vmem>>, vector<1x1x32xf32>
    %108 = vector.shape_cast %107 : vector<1x1x32xf32> to vector<1x32xf32>
    %109 = vector.broadcast %108 : vector<1x32xf32> to vector<8x32xf32>
    %110 = arith.addf %106, %109 : vector<8x32xf32>
    %111 = arith.addf %94, %110 : vector<8x32xf32>
    %c0_67 = arith.constant 0 : index
    %c0_68 = arith.constant 0 : index
    %c0_69 = arith.constant 0 : index
    %112 = vector.load %arg18[%c0_67, %c0_68, %c0_69] : memref<2x1x32xf32, #tpu.memory_space<vmem>>, vector<1x1x32xf32>
    %113 = vector.shape_cast %112 : vector<1x1x32xf32> to vector<1x32xf32>
    %c0_70 = arith.constant 0 : index
    %c0_71 = arith.constant 0 : index
    %c0_72 = arith.constant 0 : index
    %114 = vector.load %arg19[%c0_70, %c0_71, %c0_72] : memref<2x1x32xf32, #tpu.memory_space<vmem>>, vector<1x1x32xf32>
    %115 = vector.shape_cast %114 : vector<1x1x32xf32> to vector<1x32xf32>
    %cst_73 = arith.constant dense<0.000000e+00> : vector<8xf32>
    %116 = vector.multi_reduction <add>, %111, %cst_73 [1] : vector<8x32xf32> to vector<8xf32>
    %117 = vector.shape_cast %116 : vector<8xf32> to vector<8x1xf32>
    %cst_74 = arith.constant 3.200000e+01 : f32
    %118 = vector.broadcast %cst_74 : f32 to vector<8x1xf32>
    %119 = arith.divf %117, %118 : vector<8x1xf32>
    %120 = vector.broadcast %119 : vector<8x1xf32> to vector<8x32xf32>
    %121 = arith.subf %111, %120 : vector<8x32xf32>
    %122 = arith.mulf %121, %121 : vector<8x32xf32>
    %cst_75 = arith.constant dense<0.000000e+00> : vector<8xf32>
    %123 = vector.multi_reduction <add>, %122, %cst_75 [1] : vector<8x32xf32> to vector<8xf32>
    %124 = vector.shape_cast %123 : vector<8xf32> to vector<8x1xf32>
    %cst_76 = arith.constant 3.200000e+01 : f32
    %125 = vector.broadcast %cst_76 : f32 to vector<8x1xf32>
    %126 = arith.divf %124, %125 : vector<8x1xf32>
    %127 = vector.broadcast %119 : vector<8x1xf32> to vector<8x32xf32>
    %128 = arith.subf %111, %127 : vector<8x32xf32>
    %cst_77 = arith.constant 9.99999974E-6 : f32
    %129 = vector.broadcast %cst_77 : f32 to vector<8x1xf32>
    %130 = arith.addf %126, %129 : vector<8x1xf32>
    %131 = math.rsqrt %130 : vector<8x1xf32>
    %132 = vector.broadcast %131 : vector<8x1xf32> to vector<8x32xf32>
    %133 = arith.mulf %128, %132 : vector<8x32xf32>
    %134 = vector.broadcast %113 : vector<1x32xf32> to vector<8x32xf32>
    %135 = arith.mulf %133, %134 : vector<8x32xf32>
    %136 = vector.broadcast %115 : vector<1x32xf32> to vector<8x32xf32>
    %137 = arith.addf %135, %136 : vector<8x32xf32>
    %c1 = arith.constant 1 : index
    %c0_78 = arith.constant 0 : index
    %c0_79 = arith.constant 0 : index
    %138 = vector.load %arg4[%c1, %c0_78, %c0_79] : memref<2x32x32xf32, #tpu.memory_space<vmem>>, vector<1x32x32xf32>
    %139 = vector.shape_cast %138 : vector<1x32x32xf32> to vector<32x32xf32>
    %c1_80 = arith.constant 1 : index
    %c0_81 = arith.constant 0 : index
    %c0_82 = arith.constant 0 : index
    %140 = vector.load %arg6[%c1_80, %c0_81, %c0_82] : memref<2x32x32xf32, #tpu.memory_space<vmem>>, vector<1x32x32xf32>
    %141 = vector.shape_cast %140 : vector<1x32x32xf32> to vector<32x32xf32>
    %c1_83 = arith.constant 1 : index
    %c0_84 = arith.constant 0 : index
    %c0_85 = arith.constant 0 : index
    %142 = vector.load %arg8[%c1_83, %c0_84, %c0_85] : memref<2x32x32xf32, #tpu.memory_space<vmem>>, vector<1x32x32xf32>
    %143 = vector.shape_cast %142 : vector<1x32x32xf32> to vector<32x32xf32>
    %c1_86 = arith.constant 1 : index
    %c0_87 = arith.constant 0 : index
    %c0_88 = arith.constant 0 : index
    %144 = vector.load %arg10[%c1_86, %c0_87, %c0_88] : memref<2x32x32xf32, #tpu.memory_space<vmem>>, vector<1x32x32xf32>
    %145 = vector.shape_cast %144 : vector<1x32x32xf32> to vector<32x32xf32>
    %c1_89 = arith.constant 1 : index
    %c0_90 = arith.constant 0 : index
    %c0_91 = arith.constant 0 : index
    %146 = vector.load %arg5[%c1_89, %c0_90, %c0_91] : memref<2x1x32xf32, #tpu.memory_space<vmem>>, vector<1x1x32xf32>
    %147 = vector.shape_cast %146 : vector<1x1x32xf32> to vector<1x32xf32>
    %c1_92 = arith.constant 1 : index
    %c0_93 = arith.constant 0 : index
    %c0_94 = arith.constant 0 : index
    %148 = vector.load %arg7[%c1_92, %c0_93, %c0_94] : memref<2x1x32xf32, #tpu.memory_space<vmem>>, vector<1x1x32xf32>
    %149 = vector.shape_cast %148 : vector<1x1x32xf32> to vector<1x32xf32>
    %c1_95 = arith.constant 1 : index
    %c0_96 = arith.constant 0 : index
    %c0_97 = arith.constant 0 : index
    %150 = vector.load %arg9[%c1_95, %c0_96, %c0_97] : memref<2x1x32xf32, #tpu.memory_space<vmem>>, vector<1x1x32xf32>
    %151 = vector.shape_cast %150 : vector<1x1x32xf32> to vector<1x32xf32>
    %c1_98 = arith.constant 1 : index
    %c0_99 = arith.constant 0 : index
    %c0_100 = arith.constant 0 : index
    %152 = vector.load %arg11[%c1_98, %c0_99, %c0_100] : memref<2x1x32xf32, #tpu.memory_space<vmem>>, vector<1x1x32xf32>
    %153 = vector.shape_cast %152 : vector<1x1x32xf32> to vector<1x32xf32>
    %cst_101 = arith.constant dense<0.000000e+00> : vector<8x32xf32>
    %154 = tpu.matmul %137, %139, %cst_101 {dimension_numbers = #tpu.dot_dimension_numbers<[1], [0], [0], [1], [0, 0, 1, 1], [], []>} : vector<8x32xf32>, vector<32x32xf32>, vector<8x32xf32> -> vector<8x32xf32>
    %155 = vector.broadcast %147 : vector<1x32xf32> to vector<8x32xf32>
    %156 = arith.addf %154, %155 : vector<8x32xf32>
    %cst_102 = arith.constant dense<0.000000e+00> : vector<8x32xf32>
    %157 = tpu.matmul %137, %141, %cst_102 {dimension_numbers = #tpu.dot_dimension_numbers<[1], [0], [0], [1], [0, 0, 1, 1], [], []>} : vector<8x32xf32>, vector<32x32xf32>, vector<8x32xf32> -> vector<8x32xf32>
    %158 = vector.broadcast %149 : vector<1x32xf32> to vector<8x32xf32>
    %159 = arith.addf %157, %158 : vector<8x32xf32>
    %cst_103 = arith.constant dense<0.000000e+00> : vector<8x32xf32>
    %160 = tpu.matmul %137, %143, %cst_103 {dimension_numbers = #tpu.dot_dimension_numbers<[1], [0], [0], [1], [0, 0, 1, 1], [], []>} : vector<8x32xf32>, vector<32x32xf32>, vector<8x32xf32> -> vector<8x32xf32>
    %161 = vector.broadcast %151 : vector<1x32xf32> to vector<8x32xf32>
    %162 = arith.addf %160, %161 : vector<8x32xf32>
    %163 = vector.shape_cast %156 : vector<8x32xf32> to vector<1x8x4x8xf32>
    %164 = tpu.transpose %163, [0, 2, 1, 3] : vector<1x8x4x8xf32> -> vector<1x4x8x8xf32>
    %165 = vector.shape_cast %164 : vector<1x4x8x8xf32> to vector<4x8x8xf32>
    %166 = vector.shape_cast %159 : vector<8x32xf32> to vector<1x8x4x8xf32>
    %167 = tpu.transpose %166, [0, 2, 1, 3] : vector<1x8x4x8xf32> -> vector<1x4x8x8xf32>
    %168 = vector.shape_cast %167 : vector<1x4x8x8xf32> to vector<4x8x8xf32>
    %169 = vector.shape_cast %162 : vector<8x32xf32> to vector<1x8x4x8xf32>
    %170 = tpu.transpose %169, [0, 2, 1, 3] : vector<1x8x4x8xf32> -> vector<1x4x8x8xf32>
    %171 = vector.shape_cast %170 : vector<1x4x8x8xf32> to vector<4x8x8xf32>
    "tpu.trace_start"() <{level = 10 : i32, message = "ble,bse->bls"}> : () -> ()
    %cst_104 = arith.constant dense<0.000000e+00> : vector<4x8x8xf32>
    %172 = tpu.matmul %165, %168, %cst_104 {dimension_numbers = #tpu.dot_dimension_numbers<[2], [2], [1], [1], [0, 0, 0, 1, 1, 1], [0], [0]>} : vector<4x8x8xf32>, vector<4x8x8xf32>, vector<4x8x8xf32> -> vector<4x8x8xf32>
    "tpu.trace_stop"() : () -> ()
    %173 = vector.shape_cast %172 : vector<4x8x8xf32> to vector<1x4x8x8xf32>
    %174 = vector.broadcast %5 : vector<1x1x1x1xf32> to vector<1x4x8x8xf32>
    %175 = arith.mulf %173, %174 : vector<1x4x8x8xf32>
    %176 = vector.broadcast %9 : vector<1x1x1x8xf32> to vector<1x4x8x8xf32>
    %177 = arith.addf %175, %176 : vector<1x4x8x8xf32>
    %cst_105 = arith.constant dense<0xFF800000> : vector<1x4x8xf32>
    %178 = vector.multi_reduction <maximumf>, %177, %cst_105 [3] : vector<1x4x8x8xf32> to vector<1x4x8xf32>
    %179 = vector.shape_cast %178 : vector<1x4x8xf32> to vector<1x4x8x1xf32>
    %180 = vector.broadcast %179 : vector<1x4x8x1xf32> to vector<1x4x8x8xf32>
    %181 = arith.subf %177, %180 : vector<1x4x8x8xf32>
    %182 = math.exp %181 : vector<1x4x8x8xf32>
    %cst_106 = arith.constant dense<0.000000e+00> : vector<1x4x8xf32>
    %183 = vector.multi_reduction <add>, %182, %cst_106 [3] : vector<1x4x8x8xf32> to vector<1x4x8xf32>
    %184 = vector.shape_cast %183 : vector<1x4x8xf32> to vector<1x4x8x1xf32>
    %185 = tpu.reciprocal %184 {approx = true} : vector<1x4x8x1xf32> -> vector<1x4x8x1xf32>
    %186 = vector.broadcast %185 : vector<1x4x8x1xf32> to vector<1x4x8x8xf32>
    %187 = arith.mulf %182, %186 : vector<1x4x8x8xf32>
    %188 = vector.shape_cast %187 : vector<1x4x8x8xf32> to vector<4x8x8xf32>
    "tpu.trace_start"() <{level = 10 : i32, message = "bls,bse->ble"}> : () -> ()
    %cst_107 = arith.constant dense<0.000000e+00> : vector<4x8x8xf32>
    %189 = tpu.matmul %188, %171, %cst_107 {dimension_numbers = #tpu.dot_dimension_numbers<[2], [1], [1], [2], [0, 0, 0, 1, 1, 2], [0], [0]>} : vector<4x8x8xf32>, vector<4x8x8xf32>, vector<4x8x8xf32> -> vector<4x8x8xf32>
    "tpu.trace_stop"() : () -> ()
    %190 = vector.shape_cast %189 : vector<4x8x8xf32> to vector<1x4x8x8xf32>
    %191 = tpu.transpose %190, [0, 2, 1, 3] : vector<1x4x8x8xf32> -> vector<1x8x4x8xf32>
    %192 = vector.shape_cast %191 : vector<1x8x4x8xf32> to vector<8x32xf32>
    %cst_108 = arith.constant dense<0.000000e+00> : vector<8x32xf32>
    %193 = tpu.matmul %192, %145, %cst_108 {dimension_numbers = #tpu.dot_dimension_numbers<[1], [0], [0], [1], [0, 0, 1, 1], [], []>} : vector<8x32xf32>, vector<32x32xf32>, vector<8x32xf32> -> vector<8x32xf32>
    %194 = vector.broadcast %153 : vector<1x32xf32> to vector<8x32xf32>
    %195 = arith.addf %193, %194 : vector<8x32xf32>
    %196 = arith.addf %137, %195 : vector<8x32xf32>
    %c1_109 = arith.constant 1 : index
    %c0_110 = arith.constant 0 : index
    %c0_111 = arith.constant 0 : index
    %197 = vector.load %arg12[%c1_109, %c0_110, %c0_111] : memref<2x1x32xf32, #tpu.memory_space<vmem>>, vector<1x1x32xf32>
    %198 = vector.shape_cast %197 : vector<1x1x32xf32> to vector<1x32xf32>
    %c1_112 = arith.constant 1 : index
    %c0_113 = arith.constant 0 : index
    %c0_114 = arith.constant 0 : index
    %199 = vector.load %arg13[%c1_112, %c0_113, %c0_114] : memref<2x1x32xf32, #tpu.memory_space<vmem>>, vector<1x1x32xf32>
    %200 = vector.shape_cast %199 : vector<1x1x32xf32> to vector<1x32xf32>
    %cst_115 = arith.constant dense<0.000000e+00> : vector<8xf32>
    %201 = vector.multi_reduction <add>, %196, %cst_115 [1] : vector<8x32xf32> to vector<8xf32>
    %202 = vector.shape_cast %201 : vector<8xf32> to vector<8x1xf32>
    %cst_116 = arith.constant 3.200000e+01 : f32
    %203 = vector.broadcast %cst_116 : f32 to vector<8x1xf32>
    %204 = arith.divf %202, %203 : vector<8x1xf32>
    %205 = vector.broadcast %204 : vector<8x1xf32> to vector<8x32xf32>
    %206 = arith.subf %196, %205 : vector<8x32xf32>
    %207 = arith.mulf %206, %206 : vector<8x32xf32>
    %cst_117 = arith.constant dense<0.000000e+00> : vector<8xf32>
    %208 = vector.multi_reduction <add>, %207, %cst_117 [1] : vector<8x32xf32> to vector<8xf32>
    %209 = vector.shape_cast %208 : vector<8xf32> to vector<8x1xf32>
    %cst_118 = arith.constant 3.200000e+01 : f32
    %210 = vector.broadcast %cst_118 : f32 to vector<8x1xf32>
    %211 = arith.divf %209, %210 : vector<8x1xf32>
    %212 = vector.broadcast %204 : vector<8x1xf32> to vector<8x32xf32>
    %213 = arith.subf %196, %212 : vector<8x32xf32>
    %cst_119 = arith.constant 9.99999974E-6 : f32
    %214 = vector.broadcast %cst_119 : f32 to vector<8x1xf32>
    %215 = arith.addf %211, %214 : vector<8x1xf32>
    %216 = math.rsqrt %215 : vector<8x1xf32>
    %217 = vector.broadcast %216 : vector<8x1xf32> to vector<8x32xf32>
    %218 = arith.mulf %213, %217 : vector<8x32xf32>
    %219 = vector.broadcast %198 : vector<1x32xf32> to vector<8x32xf32>
    %220 = arith.mulf %218, %219 : vector<8x32xf32>
    %221 = vector.broadcast %200 : vector<1x32xf32> to vector<8x32xf32>
    %222 = arith.addf %220, %221 : vector<8x32xf32>
    %c1_120 = arith.constant 1 : index
    %c0_121 = arith.constant 0 : index
    %c0_122 = arith.constant 0 : index
    %223 = vector.load %arg14[%c1_120, %c0_121, %c0_122] : memref<2x32x64xf32, #tpu.memory_space<vmem>>, vector<1x32x64xf32>
    %224 = vector.shape_cast %223 : vector<1x32x64xf32> to vector<32x64xf32>
    %cst_123 = arith.constant dense<0.000000e+00> : vector<8x64xf32>
    %225 = tpu.matmul %222, %224, %cst_123 {dimension_numbers = #tpu.dot_dimension_numbers<[1], [0], [0], [1], [0, 0, 1, 1], [], []>} : vector<8x32xf32>, vector<32x64xf32>, vector<8x64xf32> -> vector<8x64xf32>
    %c1_124 = arith.constant 1 : index
    %c0_125 = arith.constant 0 : index
    %c0_126 = arith.constant 0 : index
    %226 = vector.load %arg15[%c1_124, %c0_125, %c0_126] : memref<2x1x64xf32, #tpu.memory_space<vmem>>, vector<1x1x64xf32>
    %227 = vector.shape_cast %226 : vector<1x1x64xf32> to vector<1x64xf32>
    %228 = vector.broadcast %227 : vector<1x64xf32> to vector<8x64xf32>
    %229 = arith.addf %225, %228 : vector<8x64xf32>
    %cst_127 = arith.constant 0.000000e+00 : f32
    %230 = vector.broadcast %cst_127 : f32 to vector<8x64xf32>
    %231 = arith.maximumf %229, %230 : vector<8x64xf32>
    %c1_128 = arith.constant 1 : index
    %c0_129 = arith.constant 0 : index
    %c0_130 = arith.constant 0 : index
    %232 = vector.load %arg16[%c1_128, %c0_129, %c0_130] : memref<2x64x32xf32, #tpu.memory_space<vmem>>, vector<1x64x32xf32>
    %233 = vector.shape_cast %232 : vector<1x64x32xf32> to vector<64x32xf32>
    %cst_131 = arith.constant dense<0.000000e+00> : vector<8x32xf32>
    %234 = tpu.matmul %231, %233, %cst_131 {dimension_numbers = #tpu.dot_dimension_numbers<[1], [0], [0], [1], [0, 0, 1, 1], [], []>} : vector<8x64xf32>, vector<64x32xf32>, vector<8x32xf32> -> vector<8x32xf32>
    %c1_132 = arith.constant 1 : index
    %c0_133 = arith.constant 0 : index
    %c0_134 = arith.constant 0 : index
    %235 = vector.load %arg17[%c1_132, %c0_133, %c0_134] : memref<2x1x32xf32, #tpu.memory_space<vmem>>, vector<1x1x32xf32>
    %236 = vector.shape_cast %235 : vector<1x1x32xf32> to vector<1x32xf32>
    %237 = vector.broadcast %236 : vector<1x32xf32> to vector<8x32xf32>
    %238 = arith.addf %234, %237 : vector<8x32xf32>
    %239 = arith.addf %222, %238 : vector<8x32xf32>
    %c1_135 = arith.constant 1 : index
    %c0_136 = arith.constant 0 : index
    %c0_137 = arith.constant 0 : index
    %240 = vector.load %arg18[%c1_135, %c0_136, %c0_137] : memref<2x1x32xf32, #tpu.memory_space<vmem>>, vector<1x1x32xf32>
    %241 = vector.shape_cast %240 : vector<1x1x32xf32> to vector<1x32xf32>
    %c1_138 = arith.constant 1 : index
    %c0_139 = arith.constant 0 : index
    %c0_140 = arith.constant 0 : index
    %242 = vector.load %arg19[%c1_138, %c0_139, %c0_140] : memref<2x1x32xf32, #tpu.memory_space<vmem>>, vector<1x1x32xf32>
    %243 = vector.shape_cast %242 : vector<1x1x32xf32> to vector<1x32xf32>
    %cst_141 = arith.constant dense<0.000000e+00> : vector<8xf32>
    %244 = vector.multi_reduction <add>, %239, %cst_141 [1] : vector<8x32xf32> to vector<8xf32>
    %245 = vector.shape_cast %244 : vector<8xf32> to vector<8x1xf32>
    %cst_142 = arith.constant 3.200000e+01 : f32
    %246 = vector.broadcast %cst_142 : f32 to vector<8x1xf32>
    %247 = arith.divf %245, %246 : vector<8x1xf32>
    %248 = vector.broadcast %247 : vector<8x1xf32> to vector<8x32xf32>
    %249 = arith.subf %239, %248 : vector<8x32xf32>
    %250 = arith.mulf %249, %249 : vector<8x32xf32>
    %cst_143 = arith.constant dense<0.000000e+00> : vector<8xf32>
    %251 = vector.multi_reduction <add>, %250, %cst_143 [1] : vector<8x32xf32> to vector<8xf32>
    %252 = vector.shape_cast %251 : vector<8xf32> to vector<8x1xf32>
    %cst_144 = arith.constant 3.200000e+01 : f32
    %253 = vector.broadcast %cst_144 : f32 to vector<8x1xf32>
    %254 = arith.divf %252, %253 : vector<8x1xf32>
    %255 = vector.broadcast %247 : vector<8x1xf32> to vector<8x32xf32>
    %256 = arith.subf %239, %255 : vector<8x32xf32>
    %cst_145 = arith.constant 9.99999974E-6 : f32
    %257 = vector.broadcast %cst_145 : f32 to vector<8x1xf32>
    %258 = arith.addf %254, %257 : vector<8x1xf32>
    %259 = math.rsqrt %258 : vector<8x1xf32>
    %260 = vector.broadcast %259 : vector<8x1xf32> to vector<8x32xf32>
    %261 = arith.mulf %256, %260 : vector<8x32xf32>
    %262 = vector.broadcast %241 : vector<1x32xf32> to vector<8x32xf32>
    %263 = arith.mulf %261, %262 : vector<8x32xf32>
    %264 = vector.broadcast %243 : vector<1x32xf32> to vector<8x32xf32>
    %265 = arith.addf %263, %264 : vector<8x32xf32>
    %c0_146 = arith.constant 0 : index
    %c0_147 = arith.constant 0 : index
    %266 = vector.load %arg20[%c0_146, %c0_147] : memref<1x32xf32, #tpu.memory_space<vmem>>, vector<1x32xf32>
    %c0_148 = arith.constant 0 : index
    %c0_149 = arith.constant 0 : index
    %267 = vector.load %arg21[%c0_148, %c0_149] : memref<1x32xf32, #tpu.memory_space<vmem>>, vector<1x32xf32>
    %cst_150 = arith.constant dense<0.000000e+00> : vector<8xf32>
    %268 = vector.multi_reduction <add>, %265, %cst_150 [1] : vector<8x32xf32> to vector<8xf32>
    %269 = vector.shape_cast %268 : vector<8xf32> to vector<8x1xf32>
    %cst_151 = arith.constant 3.200000e+01 : f32
    %270 = vector.broadcast %cst_151 : f32 to vector<8x1xf32>
    %271 = arith.divf %269, %270 : vector<8x1xf32>
    %272 = vector.broadcast %271 : vector<8x1xf32> to vector<8x32xf32>
    %273 = arith.subf %265, %272 : vector<8x32xf32>
    %274 = arith.mulf %273, %273 : vector<8x32xf32>
    %cst_152 = arith.constant dense<0.000000e+00> : vector<8xf32>
    %275 = vector.multi_reduction <add>, %274, %cst_152 [1] : vector<8x32xf32> to vector<8xf32>
    %276 = vector.shape_cast %275 : vector<8xf32> to vector<8x1xf32>
    %cst_153 = arith.constant 3.200000e+01 : f32
    %277 = vector.broadcast %cst_153 : f32 to vector<8x1xf32>
    %278 = arith.divf %276, %277 : vector<8x1xf32>
    %279 = vector.broadcast %271 : vector<8x1xf32> to vector<8x32xf32>
    %280 = arith.subf %265, %279 : vector<8x32xf32>
    %cst_154 = arith.constant 9.99999974E-6 : f32
    %281 = vector.broadcast %cst_154 : f32 to vector<8x1xf32>
    %282 = arith.addf %278, %281 : vector<8x1xf32>
    %283 = math.rsqrt %282 : vector<8x1xf32>
    %284 = vector.broadcast %283 : vector<8x1xf32> to vector<8x32xf32>
    %285 = arith.mulf %280, %284 : vector<8x32xf32>
    %286 = vector.broadcast %266 : vector<1x32xf32> to vector<8x32xf32>
    %287 = arith.mulf %285, %286 : vector<8x32xf32>
    %288 = vector.broadcast %267 : vector<1x32xf32> to vector<8x32xf32>
    %289 = arith.addf %287, %288 : vector<8x32xf32>
    %290 = vector.shape_cast %289 : vector<8x32xf32> to vector<1x8x32xf32>
    %c0_155 = arith.constant 0 : index
    %c0_156 = arith.constant 0 : index
    %c0_157 = arith.constant 0 : index
    %291 = vector.load %arg22[%c0_155, %c0_156, %c0_157] : memref<1x8x32xf32, #tpu.memory_space<vmem>>, vector<1x8x32xf32>
    tpu.vector_store %arg22[%c0_155, %c0_156, %c0_157], %290 {strides = array<i32>} : memref<1x8x32xf32, #tpu.memory_space<vmem>>, vector<1x8x32xf32>,
    return
  }
  func.func @transform_0(%arg0: i32) -> (i32, i32, i32) {
    %c0_i32 = arith.constant 0 : i32
    %c0_i32_0 = arith.constant 0 : i32
    %c0_i32_1 = arith.constant 0 : i32
    return %arg0, %c0_i32, %c0_i32_0 : i32, i32, i32
  }
  func.func @transform_1(%arg0: i32) -> (i32, i32, i32) {
    %c0_i32 = arith.constant 0 : i32
    %c0_i32_0 = arith.constant 0 : i32
    %c0_i32_1 = arith.constant 0 : i32
    return %arg0, %c0_i32, %c0_i32_0 : i32, i32, i32
  }
  func.func @transform_2(%arg0: i32) -> (i32, i32, i32) {
    %c0_i32 = arith.constant 0 : i32
    %c0_i32_0 = arith.constant 0 : i32
    %c0_i32_1 = arith.constant 0 : i32
    return %arg0, %c0_i32, %c0_i32_0 : i32, i32, i32
  }
  func.func @transform_3(%arg0: i32) -> (i32, i32, i32) {
    %c0_i32 = arith.constant 0 : i32
    %c0_i32_0 = arith.constant 0 : i32
    %c0_i32_1 = arith.constant 0 : i32
    %c0_i32_2 = arith.constant 0 : i32
    return %c0_i32, %c0_i32_0, %c0_i32_1 : i32, i32, i32
  }
  func.func @transform_4(%arg0: i32) -> (i32, i32, i32) {
    %c0_i32 = arith.constant 0 : i32
    %c0_i32_0 = arith.constant 0 : i32
    %c0_i32_1 = arith.constant 0 : i32
    %c0_i32_2 = arith.constant 0 : i32
    return %c0_i32, %c0_i32_0, %c0_i32_1 : i32, i32, i32
  }
  func.func @transform_5(%arg0: i32) -> (i32, i32, i32) {
    %c0_i32 = arith.constant 0 : i32
    %c0_i32_0 = arith.constant 0 : i32
    %c0_i32_1 = arith.constant 0 : i32
    %c0_i32_2 = arith.constant 0 : i32
    return %c0_i32, %c0_i32_0, %c0_i32_1 : i32, i32, i32
  }
  func.func @transform_6(%arg0: i32) -> (i32, i32, i32) {
    %c0_i32 = arith.constant 0 : i32
    %c0_i32_0 = arith.constant 0 : i32
    %c0_i32_1 = arith.constant 0 : i32
    %c0_i32_2 = arith.constant 0 : i32
    return %c0_i32, %c0_i32_0, %c0_i32_1 : i32, i32, i32
  }
  func.func @transform_7(%arg0: i32) -> (i32, i32, i32) {
    %c0_i32 = arith.constant 0 : i32
    %c0_i32_0 = arith.constant 0 : i32
    %c0_i32_1 = arith.constant 0 : i32
    %c0_i32_2 = arith.constant 0 : i32
    return %c0_i32, %c0_i32_0, %c0_i32_1 : i32, i32, i32
  }
  func.func @transform_8(%arg0: i32) -> (i32, i32, i32) {
    %c0_i32 = arith.constant 0 : i32
    %c0_i32_0 = arith.constant 0 : i32
    %c0_i32_1 = arith.constant 0 : i32
    %c0_i32_2 = arith.constant 0 : i32
    return %c0_i32, %c0_i32_0, %c0_i32_1 : i32, i32, i32
  }
  func.func @transform_9(%arg0: i32) -> (i32, i32, i32) {
    %c0_i32 = arith.constant 0 : i32
    %c0_i32_0 = arith.constant 0 : i32
    %c0_i32_1 = arith.constant 0 : i32
    %c0_i32_2 = arith.constant 0 : i32
    return %c0_i32, %c0_i32_0, %c0_i32_1 : i32, i32, i32
  }
  func.func @transform_10(%arg0: i32) -> (i32, i32, i32) {
    %c0_i32 = arith.constant 0 : i32
    %c0_i32_0 = arith.constant 0 : i32
    %c0_i32_1 = arith.constant 0 : i32
    %c0_i32_2 = arith.constant 0 : i32
    return %c0_i32, %c0_i32_0, %c0_i32_1 : i32, i32, i32
  }
  func.func @transform_11(%arg0: i32) -> (i32, i32, i32) {
    %c0_i32 = arith.constant 0 : i32
    %c0_i32_0 = arith.constant 0 : i32
    %c0_i32_1 = arith.constant 0 : i32
    %c0_i32_2 = arith.constant 0 : i32
    return %c0_i32, %c0_i32_0, %c0_i32_1 : i32, i32, i32
  }
  func.func @transform_12(%arg0: i32) -> (i32, i32, i32) {
    %c0_i32 = arith.constant 0 : i32
    %c0_i32_0 = arith.constant 0 : i32
    %c0_i32_1 = arith.constant 0 : i32
    %c0_i32_2 = arith.constant 0 : i32
    return %c0_i32, %c0_i32_0, %c0_i32_1 : i32, i32, i32
  }
  func.func @transform_13(%arg0: i32) -> (i32, i32, i32) {
    %c0_i32 = arith.constant 0 : i32
    %c0_i32_0 = arith.constant 0 : i32
    %c0_i32_1 = arith.constant 0 : i32
    %c0_i32_2 = arith.constant 0 : i32
    return %c0_i32, %c0_i32_0, %c0_i32_1 : i32, i32, i32
  }
  func.func @transform_14(%arg0: i32) -> (i32, i32, i32) {
    %c0_i32 = arith.constant 0 : i32
    %c0_i32_0 = arith.constant 0 : i32
    %c0_i32_1 = arith.constant 0 : i32
    %c0_i32_2 = arith.constant 0 : i32
    return %c0_i32, %c0_i32_0, %c0_i32_1 : i32, i32, i32
  }
  func.func @transform_15(%arg0: i32) -> (i32, i32, i32) {
    %c0_i32 = arith.constant 0 : i32
    %c0_i32_0 = arith.constant 0 : i32
    %c0_i32_1 = arith.constant 0 : i32
    %c0_i32_2 = arith.constant 0 : i32
    return %c0_i32, %c0_i32_0, %c0_i32_1 : i32, i32, i32
  }
  func.func @transform_16(%arg0: i32) -> (i32, i32, i32) {
    %c0_i32 = arith.constant 0 : i32
    %c0_i32_0 = arith.constant 0 : i32
    %c0_i32_1 = arith.constant 0 : i32
    %c0_i32_2 = arith.constant 0 : i32
    return %c0_i32, %c0_i32_0, %c0_i32_1 : i32, i32, i32
  }
  func.func @transform_17(%arg0: i32) -> (i32, i32, i32) {
    %c0_i32 = arith.constant 0 : i32
    %c0_i32_0 = arith.constant 0 : i32
    %c0_i32_1 = arith.constant 0 : i32
    %c0_i32_2 = arith.constant 0 : i32
    return %c0_i32, %c0_i32_0, %c0_i32_1 : i32, i32, i32
  }
  func.func @transform_18(%arg0: i32) -> (i32, i32, i32) {
    %c0_i32 = arith.constant 0 : i32
    %c0_i32_0 = arith.constant 0 : i32
    %c0_i32_1 = arith.constant 0 : i32
    %c0_i32_2 = arith.constant 0 : i32
    return %c0_i32, %c0_i32_0, %c0_i32_1 : i32, i32, i32
  }
  func.func @transform_19(%arg0: i32) -> (i32, i32) {
    %c0_i32 = arith.constant 0 : i32
    %c0_i32_0 = arith.constant 0 : i32
    %c0_i32_1 = arith.constant 0 : i32
    return %c0_i32, %c0_i32_0 : i32, i32
  }
  func.func @transform_20(%arg0: i32) -> (i32, i32) {
    %c0_i32 = arith.constant 0 : i32
    %c0_i32_0 = arith.constant 0 : i32
    %c0_i32_1 = arith.constant 0 : i32
    return %c0_i32, %c0_i32_0 : i32, i32
  }
  func.func @transform_21(%arg0: i32) -> (i32, i32, i32) {
    %c0_i32 = arith.constant 0 : i32
    %c0_i32_0 = arith.constant 0 : i32
    %c0_i32_1 = arith.constant 0 : i32
    return %arg0, %c0_i32, %c0_i32_0 : i32, i32, i32
  }
}

</mosaic_0001>

<bundles_post_ra>
// kernel: tpu_custom_call.1
= control target key start
LH: loop header
LB: loop body
LE: loop exit
PB: predicated region body
PF: predicated region fallthrough
CT: control target
= control target key end

     0   :  { %s6144_s0 = inlined_call_operand.hbm [shape: f32[2,8,32], index: 0, kind: input, shape index: {}]   ;;  %s6145_s1 = inlined_call_operand.vmem [shape: f32[2,1,1], index: 1, kind: input, shape index: {}]   ;;  %s6146_s2 = inlined_call_operand.vmem [shape: f32[2,1,8], index: 2, kind: input, shape index: {}]   ;;  %s6147_s3 = inlined_call_operand.vmem [shape: f32[2,32,32], index: 3, kind: input, shape index: {}]   ;;  %s6148_s4 = inlined_call_operand.vmem [shape: f32[2,1,32], index: 4, kind: input, shape index: {}]   ;;  %s6149_s5 = inlined_call_operand.vmem [shape: f32[2,32,32], index: 5, kind: input, shape index: {}]   ;;  %s6150_s6 = inlined_call_operand.vmem [shape: f32[2,1,32], index: 6, kind: input, shape index: {}]   ;;  %s6151_s7 = inlined_call_operand.vmem [shape: f32[2,32,32], index: 7, kind: input, shape index: {}]   ;;  %s6152_s8 = inlined_call_operand.vmem [shape: f32[2,1,32], index: 8, kind: input, shape index: {}]   ;;  %s6153_s9 = inlined_call_operand.hbm [shape: f32[2,32,32], index: 9, kind: input, shape index: {}]   ;;  %s6154_s10 = inlined_call_operand.vmem [shape: f32[2,1,32], index: 10, kind: input, shape index: {}]   ;;  %s6155_s11 = inlined_call_operand.vmem [shape: f32[2,1,32], index: 11, kind: input, shape index: {}]   ;;  %s6156_s12 = inlined_call_operand.vmem [shape: f32[2,1,32], index: 12, kind: input, shape index: {}]   ;;  %s6157_s13 = inlined_call_operand.hbm [shape: f32[2,32,64], index: 13, kind: input, shape index: {}]   ;;  %s6158_s14 = inlined_call_operand.vmem [shape: f32[2,1,64], index: 14, kind: input, shape index: {}]   ;;  %s6159_s15 = inlined_call_operand.vmem [shape: f32[2,64,32], index: 15, kind: input, shape index: {}]   ;;  %s6160_s16 = inlined_call_operand.vmem [shape: f32[2,1,32], index: 16, kind: input, shape index: {}]   ;;  %s6161_s17 = inlined_call_operand.vmem [shape: f32[2,1,32], index: 17, kind: input, shape index: {}]   ;;  %s6162_s18 = inlined_call_operand.vmem [shape: f32[2,1,32], index: 18, kind: input, shape index: {}]   ;;  %s6163_s19 = inlined_call_operand.vmem [shape: f32[1,32], index: 19, kind: input, shape index: {}]   ;;  %s6164_s20 = inlined_call_operand.vmem [shape: f32[1,32], index: 20, kind: input, shape index: {}]   ;;  %s6165_s21 = inlined_call_operand.hbm [shape: f32[2,8,32], index: 21, kind: output, shape index: {}]  }
   0x1   :  { %6187 = sst [smem:[#allocation18_spill]] %s6144_s0 }
   0x2   :  { %6188 = sst [smem:[#allocation19_spill]] %s6145_s1 }
   0x3   :  { %6189 = sst [smem:[#allocation20_spill]] %s6146_s2 }
   0x4   :  { %6190 = sst [smem:[#allocation21_spill]] %s6147_s3 }
   0x5   :  { %6191 = sst [smem:[#allocation22_spill]] %s6148_s4 }
   0x6   :  { %6192 = sst [smem:[#allocation23_spill]] %s6149_s5 }
   0x7   :  { %6193 = sst [smem:[#allocation24_spill]] %s6150_s6 }
   0x8   :  { %6194 = sst [smem:[#allocation25_spill]] %s6151_s7 }
   0x9   :  { %6195 = sst [smem:[#allocation26_spill]] %s6153_s9 }
   0xa   :  { %6196 = sst [smem:[#allocation27_spill]] %s6157_s13 }
   0xb   :  { %6197 = sst [smem:[#allocation28_spill]] %s6163_s19 }
   0xc   :  { %6198 = sst [smem:[#allocation29_spill]] %s6164_s20 }
   0xd   :  { %6199 = sst [smem:[#allocation30_spill]] %s6165_s21 }
   0xe   :  { %26 = vsyncpa [#allocation3], 0 }
   0xf   :  { %28 = vsyncpa [#allocation3 + $0x1], 0 }
  0x10   :  { %29 = vsyncpa [#allocation6], 0 }
  0x11   :  { %30 = vsyncpa [#allocation4], 0 }
  0x12   :  { %32 = vsyncpa [#allocation4 + $0x1], 0  ;;  %s5370_s2 = smov 0   ;;  %s5372_s25 = smov 0  }
  0x13   :  { %s5374_s26 = smov 0   ;;  %s5376_s27 = smov 0  }
  0x14 LB: > { %6200 = sst [smem:[#allocation12_spill]] %s5229_s2  ;;  %s5391_s3 = sadd.s32 4294967295, %s5241_s27   ;;  %s5241_s27 = sphi %s5376_s27, %s6241_s27   ;;  %s5237_s26 = sphi %s5374_s26, %s6243_s26   ;;  %s5233_s25 = sphi %s5372_s25, %s6245_s25   ;;  %s5229_s2 = sphi %s5370_s2, %s6244_s2  }
  0x15   : > { %6201 = sst [smem:[#allocation13_spill]] %s5237_s26  ;;  %s4522_s28 = sadd.s32 4294967294, %s5241_s27  }
  0x16   : > { %6202 = sst [smem:[#allocation14_spill]] %s5241_s27  ;;  %p58_p0 = scmp.ne.s32.totalorder %s5233_s25, %s5229_s2 }
  0x17   : > { %p6172_p1 = scmp.eq.s32.totalorder %s5391_s3, 0  ;;  %p518_p3 = scmp.eq.s32.totalorder %s4522_s28, 1 }
  0x18   : > { %p4523_p5 = scmp.ge.s32.totalorder %s5241_s27, 1  ;;  %p525_p7 = scmp.lt.s32.totalorder %s5241_s27, 3 }
  0x19   : > { %p5400_p4 = por %p6172_p1, %p58_p0  ;;  %p5405_p6 = por %p518_p3, %p58_p0 }
  0x1a   : > { %p5410_p8 = pnand %p4523_p5, %p525_p7  ;;  %s5243_s30 = smov [#allocation5]  }
  0x1b   : > { %s6203_s29 = scalar_select %p5400_p4, 1, 0 }
  0x1c   : > { %s6204_s0 = scalar_select %p5405_p6, 1, 0 }
  0x1d   : > { %s6206_s4 = scalar_select %p5410_p8, 1, 0 }
  0x1e   : > { %6205 = sst [smem:[#allocation15_spill]] %s6204_s0  ;;  %s555_s5 = sshll.u32 %s5243_s30, 4  ;;  %s556_s5 = int_to_ptr.vmem [resolvable:$true] %s555_s5 }
  0x1f   : > { %p4982_p9 = pneg %p5410_p8  ;;  %s5244_s23 = smov [#allocation7]  }
  0x20   : > { %s577_s1 = sshll.u32 %s5244_s23, 4  ;;  %s5104_s24 = scalar_lea.vmem %s556_s5, 1024  ;;  %s578_s1 = int_to_ptr.vmem [resolvable:$true] %s577_s1 }
  0x21   : > { %p5419_p11 = pnand %p4982_p9, %p6172_p1  ;;  %p5105_p13 = scmp.ne.s32.totalorder %s556_s5, %s5104_s24 }
  0x22   : > { %p5112_p5 = scmp.lt.s32.totalorder %s556_s5, %s556_s5  ;;  %p5113_p7 = scmp.lt.s32.totalorder %s5104_s24, %s5104_s24 }
  0x23   : > { %p5095_p12 = pneg %p5419_p11 }
  0x24   : > { %p5114_p10 = por %p5113_p7, %p5112_p5 }
  0x25   : > { %p5107_p0 = pnand %p5105_p13, %p5095_p12 }
  0x27   : > { %p5108_p3 = pneg %p5107_p0 }
  0x29   : > { %p5115_p9 = pnand %p5114_p10, %p5108_p3 }
  0x2b   : > { %5118 = shalt.err (!%p5115_p9)
}
  0x2c   : > { %s5245_s28 = smov 128   ;;  %s5246_s30 = smov 8  }
  0x2d   : > { %s6208_s9 = sld [smem:[#allocation26_spill]]  ;;  %s5130_s2 = scalar_lea.vmem %s578_s1, 1024 }
  0x2e   : > { %p5131_p1 = scmp.ne.s32.totalorder %s578_s1, %s5130_s2  ;;  %p5138_p2 = scmp.lt.s32.totalorder %s578_s1, %s578_s1 }
  0x2f   : > { %p5139_p6 = scmp.lt.s32.totalorder %s5130_s2, %s5130_s2 }
  0x30   : > { %p5133_p13 = pnand %p5131_p1, %p5095_p12 }
  0x31   : > { %p5140_p5 = por %p5139_p6, %p5138_p2 }
  0x32   : > { %p5134_p0 = pneg %p5133_p13 }
  0x33   : > { %4985 = dma.hbm_to_vmem [thread:$0]  (!%p5419_p11), %s6208_s9, 1024, %s556_s5, [#allocation6], %s5245_s28, %s5245_s28, %s5246_s30  }
  0x34   : > { %p5141_p10 = pnand %p5140_p5, %p5134_p0 }
  0x36   : > { %5144 = shalt.err (!%p5141_p10)
}
  0x37   : > { %s6209_s13 = sld [smem:[#allocation27_spill]]  ;;  %s5442_s2 = sadd.s32 1, %s5241_s27  }
  0x38   : > { %6210 = sst [smem:[#allocation16_spill]] %s5442_s2  ;;  %s45_s0 = sadd.s32 1, %s5237_s26 }
  0x39   : > { %s42_s5 = ssub.s32 %s5241_s27, %s5442_s2  ;;  %p52_p1 = scmp.ne.s32.totalorder %s5237_s26, %s5233_s25 }
  0x3a   : > { %p43_p2 = scmp.eq.s32.totalorder %s42_s5, 0  ;;  %p53_p6 = scmp.eq.s32.totalorder %s5241_s27, 0 }
  0x3b   : > { %p6211_p12 = scmp.eq.s32.totalorder %s5391_s3, 1  ;;  %p4999_p7 = scmp.lt.s32.totalorder %s5241_s27, 2 }
  0x3c   : > { %s5458_s22 = scalar_select %p43_p2, %s5237_s26, %s45_s0  }
  0x3d   : > { %4988 = dma.hbm_to_vmem [thread:$0]  (!%p5419_p11), %s6209_s13, 1024, %s578_s1, [#allocation6], %s5245_s28, %s5245_s28, %s5246_s30  }
  0x3e   : > { %p5452_p3 = por %p6211_p12, %p52_p1  ;;  %6213 = sst [smem:[#allocation17_spill]] %s5458_s22 }
  0x3f   : > { %p54_p9 = por %p53_p6, %p52_p1  ;;  %s612_s23 = sand.u32 1, %s5237_s26  }
  0x40   : > { %s6212_s21 = scalar_select %p5452_p3, 1, 0 }
  0x41   : > { %s4527_s24 = sshll.u32 %s612_s23, 3  ;;  %s4528_s1 = sshll.u32 %s5241_s27, 7 }
  0x42   : > { %s6214_s9 = sld [smem:[#allocation18_spill]]  ;;  %s616_s5 = scalar_lea.vmem [#allocation2], %s4527_s24 }
  0x43   : > { %s623_s2 = sshll.u32 %s616_s5, 4  ;;  %p5467_p11 = pnand %p4999_p7, %p54_p9  ;;  %s624_s2 = int_to_ptr.vmem [resolvable:$true] %s623_s2 }
  0x44   : > { %s613_s0 = scalar_lea.sflag [#allocation3], %s612_s23 }
  0x45   : > { %p5147_p0 = pneg %p5467_p11 }
  0x48   : > { %s5465_s13 = scalar_lea.hbm %s6214_s9, %s4528_s1  ;;  %s5150_s30 = scalar_lea.hbm %s6214_s9, 256 }
  0x49   : > { %s5145_s22 = scalar_lea.hbm %s5465_s13, 128  ;;  %p5151_p1 = scmp.lt.s32.totalorder %s5465_s13, %s6214_s9 }
  0x4a   : > { %p5146_p13 = scmp.ne.s32.totalorder %s5465_s13, %s5145_s22  ;;  %p5152_p2 = scmp.lt.s32.totalorder %s5150_s30, %s5145_s22 }
  0x4c   : > { %p5148_p5 = pnand %p5147_p0, %p5146_p13  ;;  %p5153_p6 = por %p5152_p2, %p5151_p1 }
  0x4e   : > { %p5149_p10 = pneg %p5148_p5 }
  0x50   : > { %p5154_p12 = pnand %p5153_p6, %p5149_p10 }
  0x52   : > { %5157 = shalt.err (!%p5154_p12)
}
  0x53   : > { %s5158_s5 = scalar_lea.vmem %s624_s2, 128  ;;  %s5247_s23 = smov [#allocation2]  }
  0x54   : > { %p5159_p7 = scmp.ne.s32.totalorder %s624_s2, %s5158_s5  ;;  %s5163_s27 = sshll.u32 %s5247_s23, 4  ;;  %s5164_s27 = int_to_ptr.vmem [resolvable:$false] %s5163_s27 }
  0x55   : > { %s5165_s19 = scalar_lea.vmem %s5164_s27, 256  ;;  %p5166_p13 = scmp.lt.s32.totalorder %s624_s2, %s5164_s27 }
  0x56   : > { %p5161_p9 = pnand %p5159_p7, %p5147_p0  ;;  %p5167_p5 = scmp.lt.s32.totalorder %s5165_s19, %s5158_s5 }
  0x58   : > { %p5162_p3 = pneg %p5161_p9  ;;  %p5168_p4 = por %p5167_p5, %p5166_p13 }
  0x5a   : > { %p5169_p8 = pnand %p5168_p4, %p5162_p3 }
  0x5c   : > { %5172 = shalt.err (!%p5169_p8)
}
  0x5d   : > { %4992 = dma.hbm_to_vmem [thread:$0]  (!%p5467_p11), %s5465_s13, 128, %s624_s2, %s613_s0  }
  0x5e   : > { %p6216_p10 = scmp.ne.s32.totalorder %s6206_s4, 0 }
  0x5f   : > { %s5488_s26 = sand.u32 (!%p6216_p10), 1, %s5233_s25   ;;  %p6217_p4 = scmp.ne.s32.totalorder (!%p6216_p10), %s6203_s29, 0 }
  0x60   : > { %644 = sbr.rel (%p6216_p10) target bundleno = 5264 (0x1490), region = 104  ;;  %s6181_s22 = sshll.u32 (!%p6216_p10), %s5488_s26, 3 }
  0x61   : > { %s647_s27 = scalar_lea.sflag (!%p6216_p10), [#allocation3], %s5488_s26  ;;  %s650_s19 = scalar_lea.vmem (!%p6216_p10), [#allocation2], %s6181_s22 }
  0x65   : > { %5216 = dma.done.wait (%p6217_p4), %s647_s27, 128  }
  0x66   : > { %5218 = vsyncadd (%p6217_p4), %s647_s27, 4294967168  ;;  %p6218_p8 = scmp.eq.s32.totalorder %s5391_s3, 0 }
  0x68   : > { %5220 = dma.done.wait (%p6218_p8), [#allocation6], 2048   ;;  %p6219_p3 = pmov %p6218_p8 }
  0x69   : > { %v5248_v0 = vmov 0.0   ;;  %vm5249_vm0 = vmmov 0   ;;  %s6220_s29 = sld [smem:[#allocation21_spill]]  ;;  %v5522_v5 = vld [vmem:[%s650_s19] sm:$0xff]  ;;  %vm760_vm1 = vcmask 261120   ;;  %s5250_s30 = smov 120   ;;  %v1001_v22 = vlaneseq }
  0x6a   : > { %5222 = vsyncadd (%p6219_p3), [#allocation6], 4294965248  ;;  %4742 = vmatprep.subr.mxu1 %v5248_v0  ;;  %4750 = vmatprep.mubr.msk.f32.mxu1 %vm5249_vm0, %v5248_v0  ;;  %s6221_s23 = sld [smem:[#allocation23_spill]]  ;;  %s6185_s27 = smov 104   ;;  %v5253_v23 = vmov 0   ;;  %vm1424_vm2 = vcmask 64512  }
  0x6b   : > { %4764 = vmatprep.subr.mxu0 %v5248_v0  ;;  %4772 = vmatprep.mubr.msk.f32.mxu0 %vm5249_vm0, %v5248_v0  ;;  %s6222_s28 = sld [smem:[#allocation22_spill]]  ;;  %s5252_s2 = smov 112   ;;  %v1002_v24 = vshrl.u32 %v1001_v22, 7  ;;  %v5254_v32 = vmov 1983009808   ;;  %vm2237_vm3 = vcmask 130048  }
  0x6c   : > { %s6223_s6 = sld [smem:[#allocation24_spill]]  ;;  %p723_p11 = scmp.lt.s32.totalorder %s5391_s3, 1  ;;  %5050 = vset.pattern.permute.xlu0 %v5253_v23  ;;  %v999_v33 = vunpack.c.l.s4 %v5254_v32  ;;  %v5255_v35 = vmov 1934713408   ;;  %vm2239_vm4 = vcmask 195584   ;;  %vm2451_vm5 = vcmask 523264  }
  0x6d   : > { %s6224_s7 = sld [smem:[#allocation25_spill]]  ;;  %v1732_v25 = vsub.s32 0, %v1002_v24  ;;  %v1031_v36 = vunpack.c.l.s4 %v5255_v35  ;;  %s6184_s19 = smov 16  }
  0x6e   : > { %s724_s13 = scalar_select %p723_p11, %s5391_s3, 1  ;;  %v1000_v37 = vunpack.c.0.s8 %v999_v33 }
  0x6f   : > { %v737_v1 = vld [vmem:[%s6220_s29 + $0x18] sm:$0xff]  ;;  %v736_v2 = vld [vmem:[%s6220_s29 + $0x10] sm:$0xff]  ;;  %v735_v3 = vld [vmem:[%s6220_s29 + $0x8] sm:$0xff]  ;;  %s6225_s4 = sld [smem:[#allocation19_spill]]  ;;  %v1032_v40 = vunpack.c.0.s8 %v1031_v36  ;;  %s6183_s20 = smov 8  }
  0x70   : > { %4743 = vmatpush3.msra.mxu1 %v737_v1  ;;  %v734_v4 = vld [vmem:[%s6220_s29] sm:$0xff]  ;;  %v741_v6 = vld [vmem:[%s6221_s23 + $0x18] sm:$0xff]  ;;  %v740_v7 = vld [vmem:[%s6221_s23 + $0x10] sm:$0xff]  ;;  %s6226_s5 = sld [smem:[#allocation20_spill]]  ;;  %v5597_v41 = vsub.s32 %v1000_v37, %v1002_v24  ;;  %p6235_p1 = scmp.ne.s32.totalorder %s6212_s21, 0 }
  0x71   : > { %4744 = vmatprep.subr.mxu1 %v5248_v0  ;;  %v739_v8 = vld [vmem:[%s6221_s23 + $0x8] sm:$0xff]  ;;  %v738_v9 = vld [vmem:[%s6221_s23] sm:$0xff]  ;;  %v5599_v48 = vsub.s32 %v1032_v40, %v1002_v24 }
  0x72   : > { %4745 = vmatpush3.msra.mxu1 %v736_v2  ;;  %v4534_v10 = vld [vmem:[%s6222_s28] ss:$0 sm:$0xff] }
  0x73   : > { %4746 = vmatprep.subr.mxu1 %v5248_v0  ;;  %v4536_v14 = vld [vmem:[%s6223_s6] ss:$0 sm:$0xff]  ;;  %v745_v18 = vld [vmem:[%s6224_s7 + $0x18] sm:$0xff]  ;;  %v744_v19 = vld [vmem:[%s6224_s7 + $0x10] sm:$0xff] }
  0x74   : > { %4747 = vmatpush3.msra.mxu1 %v735_v3  ;;  %4765 = vmatpush3.msra.mxu0 %v745_v18  ;;  %v743_v20 = vld [vmem:[%s6224_s7 + $0x8] sm:$0xff]  ;;  %v742_v21 = vld [vmem:[%s6224_s7] sm:$0xff] }
  0x75   : > { %4748 = vmatprep.subr.mxu1 %v5248_v0  ;;  %4766 = vmatprep.subr.mxu0 %v5248_v0  ;;  %s725_s0 = scalar_lea.vmem %s6225_s4, %s724_s13  ;;  %s6182_s4 = smov 24  }
  0x76   : > { %4749 = vmatpush3.msra.mxu1 %v734_v4  ;;  %4767 = vmatpush3.msra.mxu0 %v744_v19  ;;  %s728_s22 = scalar_lea.vmem %s6226_s5, %s724_s13  ;;  %v730_v26 = vld [vmem:[%s725_s0] sm:$0x1]  ;;  %s6233_s13 = sshll.u32 %s5488_s26, 3 }
  0x77   : > { %4751 = vmatmul.mubr.msk.f32.vlgmr.msra.gmra.mxu1 %vm760_vm1, %v5522_v5  ;;  %4753 = vmatprep.subr.mxu1 %v5248_v0  ;;  %v732_v27 = vld [vmem:[%s728_s22] sm:$0x1]  ;;  %v731_v28 = vmul.f32 0.35355338, %v730_v26  ;;  %s6231_s22 = sld [smem:[#allocation28_spill]]  ;;  %s722_s0 = scalar_lea.vmem [#allocation8], %s6233_s13 }
  0x78   : > { %4754 = vmatpush3.msra.mxu1 %v741_v6  ;;  %4761 = vmatprep.mubr.msk.f32.mxu1 %vm5249_vm0, %v5248_v0  ;;  %v733_v29 = vmul.f32 0.35355338, %v732_v27  ;;  %s4415_s1 = sshll.u32 %s722_s0, 4  ;;  %s4416_s1 = int_to_ptr.vmem [resolvable:$true] %s4415_s1 }
  0x79   : > { %4755 = vmatprep.subr.mxu1 %v5248_v0  ;;  %4768 = vmatprep.subr.mxu0 %v5248_v0  ;;  %v1733_v30 = vrot.slane %v731_v28, %v1732_v25 }
  0x7a   : > { %4756 = vmatpush3.msra.mxu1 %v740_v7  ;;  %4769 = vmatpush3.msra.mxu0 %v743_v20  ;;  %v5595_v31 = vrot.slane %v733_v29, %v1732_v25 }
  0x7b   : > { %4757 = vmatprep.subr.mxu1 %v5248_v0  ;;  %4770 = vmatprep.subr.mxu0 %v5248_v0 }
  0x7c   : > { %4758 = vmatpush3.msra.mxu1 %v739_v8  ;;  %4771 = vmatpush3.msra.mxu0 %v742_v21 }
  0x7d   : > { %4759 = vmatprep.subr.mxu1 %v5248_v0  ;;  %4785 = vmatprep.subr.mxu0 %v5248_v0 }
  0x7e   : > { %4760 = vmatpush3.msra.mxu1 %v738_v9  ;;  %4773 = vmatmul.mubr.msk.f32.vlgmr.msra.gmra.mxu0 %vm760_vm1, %v5522_v5 }
  0x7f   : > { %4762 = vmatmul.mubr.msk.f32.vlgmr.msra.gmra.mxu1 %vm760_vm1, %v5522_v5  ;;  %4775 = vmatprep.subr.mxu1 %v5248_v0 }
  0x80   : > { %4777 = vmatprep.mubr.msk.f32.mxu1 %vm5249_vm0, %v5248_v0  ;;  %4787 = vmatprep.mubr.msk.f32.mxu0 %vm5249_vm0, %v5248_v0 }
 0x137   : > { %v830_v11 = vpop.f32.mrf.mxu1 }
 0x138   : > { %v5553_v12 = vadd.f32 %v4534_v10, %v830_v11 }
 0x139   : > { %v4752_v13 = vpop.f32.mrf.mxu1 }
 0x13a   : > { %987 = vrot.lane.b32.xlu1 %v5553_v12, %s5250_s30 }
 0x13f   : > { %v906_v15 = vpop.f32.mrf.mxu1 }
 0x140   : > { %v907_v16 = vadd.f32 %v4536_v14, %v906_v15 }
 0x141   : > { %v4763_v17 = vpop.f32.mrf.mxu1 }
 0x142   : > { %1139 = vrot.lane.b32.xlu1 %v907_v16, %s6185_s27  ;;  %1133 = vrot.lane.b32.xlu0 %v907_v16, %s5250_s30 }
 0x146   : > { %993 = vrot.lane.b32.xlu1 %v5553_v12, %s6185_s27  ;;  %1136 = vrot.lane.b32.xlu0 %v907_v16, %s5252_s2 }
 0x14a   : > { %990 = vrot.lane.b32.xlu0 %v5553_v12, %s5252_s2 }
 0x14e   : > { %1735 = vperm.xlu0 %5050, %v1733_v30  }
 0x1ac   : > { %v988_v34 = vpop.permute.xlu1 %987 }
 0x1b4   : > { %v1140_v38 = vpop.permute.xlu1 %1139  ;;  %v1134_v39 = vpop.permute.xlu0 %1133 }
 0x1b5   : > { %v1158_v42 = vcombine.low %v1134_v39, %v1140_v38  ;;  %v1159_v43 = vcombine.high %v1134_v39, %v1140_v38 }
 0x1b7   : > { %v1166_v49 = vrot.slane %v1158_v42, %v5597_v41  ;;  %v1173_v50 = vrot.slane %v1159_v43, %v5597_v41 }
 0x1b8   : > { %v1137_v44 = vpop.permute.xlu0 %1136  ;;  %v994_v45 = vpop.permute.xlu1 %993 }
 0x1b9   : > { %v1142_v46 = vcombine.low %v907_v16, %v1137_v44  ;;  %v1143_v47 = vcombine.high %v907_v16, %v1137_v44  ;;  %v1012_v53 = vcombine.low %v988_v34, %v994_v45  ;;  %v1013_v54 = vcombine.high %v988_v34, %v994_v45 }
 0x1bb   : > { %v1150_v51 = vrot.slane %v1142_v46, %v5597_v41  ;;  %v1157_v52 = vrot.slane %v1143_v47, %v5597_v41  ;;  %v1020_v3 = vrot.slane %v1012_v53, %v5597_v41  ;;  %v1027_v4 = vrot.slane %v1013_v54, %v5597_v41 }
 0x1bc   : > { %v991_v55 = vpop.permute.xlu0 %990 }
 0x1bd   : > { %v1174_v56 = vcombine.low %v1150_v51, %v1166_v49  ;;  %v1175_v57 = vcombine.high %v1150_v51, %v1166_v49  ;;  %v1190_v58 = vcombine.low %v1157_v52, %v1173_v50  ;;  %v1191_v59 = vcombine.high %v1157_v52, %v1173_v50 }
 0x1be   : > { %v996_v60 = vcombine.low %v5553_v12, %v991_v55  ;;  %v997_v61 = vcombine.high %v5553_v12, %v991_v55 }
 0x1bf   : > { %v1182_v62 = vrot.slane %v1174_v56, %v5599_v48  ;;  %v1189_v63 = vrot.slane %v1175_v57, %v5599_v48  ;;  %v1198_v1 = vrot.slane %v1190_v58, %v5599_v48  ;;  %v1205_v2 = vrot.slane %v1191_v59, %v5599_v48  ;;  %v982_v59 = vpop.f32.mrf.mxu0 }
 0x1c0   : > { %v1004_v6 = vrot.slane %v996_v60, %v5597_v41  ;;  %v1011_v7 = vrot.slane %v997_v61, %v5597_v41 }
 0x1c1   : > { %v1210_v8 = vcombine.low %v1182_v62, %v1189_v63  ;;  %v4542_v9 = vcombine.high %v1182_v62, %v1189_v63  ;;  %v1226_v10 = vcombine.low %v1198_v1, %v1205_v2  ;;  %v4543_v11 = vcombine.high %v1198_v1, %v1205_v2  ;;  %v4774_v60 = vpop.f32.mrf.mxu0 }
 0x1c2   : > { %v1028_v12 = vcombine.low %v1004_v6, %v1020_v3  ;;  %v1029_v13 = vcombine.high %v1004_v6, %v1020_v3  ;;  %v1044_v14 = vcombine.low %v1011_v7, %v1027_v4  ;;  %v1045_v15 = vcombine.high %v1011_v7, %v1027_v4 }
 0x1c3   : > { %v1217_v16 = vrot.slane %v1210_v8, %v5597_v41  ;;  %v1225_v17 = vrot.slane %v4542_v9, %v5597_v41  ;;  %v1233_v18 = vrot.slane %v1226_v10, %v5597_v41  ;;  %v1241_v19 = vrot.slane %v4543_v11, %v5597_v41 }
 0x1c4   : > { %v1036_v20 = vrot.slane %v1028_v12, %v5599_v48  ;;  %v1043_v21 = vrot.slane %v1029_v13, %v5599_v48  ;;  %v1052_v22 = vrot.slane %v1044_v14, %v5599_v48  ;;  %v1059_v23 = vrot.slane %v1045_v15, %v5599_v48 }
 0x1c5   : > { %v1242_v24 = vcombine.low %v1217_v16, %v1225_v17  ;;  %v1243_v25 = vcombine.high %v1217_v16, %v1225_v17  ;;  %v1258_v26 = vcombine.low %v1233_v18, %v1241_v19  ;;  %v1259_v27 = vcombine.high %v1233_v18, %v1241_v19 }
 0x1c6   : > { %v1064_v28 = vcombine.low %v1036_v20, %v1043_v21  ;;  %v4540_v29 = vcombine.high %v1036_v20, %v1043_v21  ;;  %v1080_v30 = vcombine.low %v1052_v22, %v1059_v23  ;;  %v4541_v32 = vcombine.high %v1052_v22, %v1059_v23  ;;  %v4538_v20 = vld [vmem:[%s6152_s8] ss:$0 sm:$0xff] }
 0x1c7   : > { %v1250_v33 = vrot.slane %v1242_v24, %v5599_v48  ;;  %v1266_v34 = vrot.slane %v1258_v26, %v5599_v48  ;;  %v1257_v35 = vrot.slane %v1243_v25, %v5599_v48  ;;  %v1273_v36 = vrot.slane %v1259_v27, %v5599_v48 }
 0x1c8   : > { %v1071_v37 = vrot.slane %v1064_v28, %v5597_v41  ;;  %v1079_v38 = vrot.slane %v4540_v29, %v5597_v41  ;;  %v1087_v39 = vrot.slane %v1080_v30, %v5597_v41  ;;  %v1095_v40 = vrot.slane %v4541_v32, %v5597_v41 }
 0x1c9   : > { %v1274_v42 = vcombine.low %v1250_v33, %v1266_v34  ;;  %v1276_v43 = vcombine.low %v1257_v35, %v1273_v36  ;;  %v1275_v55 = vcombine.high %v1250_v33, %v1266_v34  ;;  %v1277_v57 = vcombine.high %v1257_v35, %v1273_v36  ;;  %v5655_v61 = vpop.permute.xlu0 %1735 }
 0x1ca   : > { %v1096_v44 = vcombine.low %v1071_v37, %v1079_v38  ;;  %v1097_v45 = vcombine.high %v1071_v37, %v1079_v38  ;;  %v1112_v46 = vcombine.low %v1087_v39, %v1095_v40  ;;  %v1113_v47 = vcombine.high %v1087_v39, %v1095_v40 }
 0x1cb   : > { %4776 = vmatpush3.xpose.msk.msra.mxu1 %vm1424_vm2, %v1274_v42  ;;  %4786 = vmatpush3.xpose.msk.msra.mxu0 %vm1424_vm2, %v1276_v43  ;;  %v983_v21 = vadd.f32 %v4538_v20, %v982_v59 }
 0x1cc   : > { %4780 = vmatprep.subr.mxu1 %v5248_v0  ;;  %v1104_v49 = vrot.slane %v1096_v44, %v5599_v48  ;;  %v1120_v50 = vrot.slane %v1112_v46, %v5599_v48  ;;  %v1111_v51 = vrot.slane %v1097_v45, %v5599_v48  ;;  %v1127_v52 = vrot.slane %v1113_v47, %v5599_v48 }
 0x1cd   : > { %4795 = vmatprep.subr.mxu0 %v5248_v0 }
 0x1ce   : > { %v1128_v53 = vcombine.low %v1104_v49, %v1120_v50  ;;  %v1130_v54 = vcombine.low %v1111_v51, %v1127_v52  ;;  %v1129_v56 = vcombine.high %v1104_v49, %v1120_v50  ;;  %v1131_v58 = vcombine.high %v1111_v51, %v1127_v52 }
 0x1d0   : > { %4778 = vmatmul.mubr.msk.f32.vlgmr.msra.gmra.mxu1 %vm1424_vm2, %v1128_v53  ;;  %4788 = vmatmul.mubr.msk.f32.vlgmr.msra.gmra.mxu0 %vm1424_vm2, %v1130_v54 }
 0x1d1   : > { %4781 = vmatpush3.xpose.msk.msra.mxu1 %vm1424_vm2, %v1275_v55  ;;  %4782 = vmatprep.mubr.msk.f32.mxu1 %vm5249_vm0, %v5248_v0 }
 0x1d2   : > { %4790 = vmatprep.subr.mxu1 %v5248_v0  ;;  %4797 = vmatprep.mubr.msk.f32.mxu0 %vm5249_vm0, %v5248_v0 }
 0x1d4   : > { %4783 = vmatmul.mubr.msk.f32.vlgmr.msra.gmra.mxu1 %vm1424_vm2, %v1129_v56 }
 0x1d5   : > { %4791 = vmatpush3.xpose.msk.msra.mxu1 %vm1424_vm2, %v1277_v57  ;;  %4792 = vmatprep.mubr.msk.f32.mxu1 %vm5249_vm0, %v5248_v0 }
 0x1d6   : > { %4800 = vmatprep.subr.mxu1 %v5248_v0 }
 0x1d8   : > { %4793 = vmatmul.mubr.msk.f32.vlgmr.msra.gmra.mxu1 %vm1424_vm2, %v1131_v58 }
 0x1d9   : > { %4802 = vmatprep.mubr.msk.f32.mxu1 %vm5249_vm0, %v5248_v0 }
 0x290   : > { %v1649_v62 = vpop.f32.mrf.mxu0  ;;  %v1497_v63 = vpop.f32.mrf.mxu1 }
 0x291   : > { %v1738_v1 = vmul.f32 %v5655_v61, %v1497_v63  ;;  %v1740_v2 = vmul.f32 %v5655_v61, %v1649_v62 }
 0x292   : > { %v4779_v3 = vpop.f32.mrf.mxu1  ;;  %v4789_v4 = vpop.f32.mrf.mxu0 }
 0x293   : > { %v1748_v6 = vadd.f32 %v5595_v31, %v1738_v1  ;;  %v1750_v10 = vadd.f32 %v5595_v31, %v1740_v2 }
 0x294   : > { %v1573_v7 = vpop.f32.mrf.mxu1 }
 0x295   : > { %v1739_v8 = vmul.f32 %v5655_v61, %v1573_v7  ;;  %v1752_v9 = vsel %vm1424_vm2, %v1748_v6, -inf  ;;  %v1758_v15 = vsel %vm1424_vm2, %v1750_v10, -inf }
 0x296   : > { %1753 = vmax.xlane.f32.xlu1 %v1752_v9  ;;  %v4784_v11 = vpop.f32.mrf.mxu1 }
 0x297   : > { %v1749_v12 = vadd.f32 %v5595_v31, %v1739_v8 }
 0x298   : > { %v1725_v13 = vpop.f32.mrf.mxu1 }
 0x299   : > { %v1741_v14 = vmul.f32 %v5655_v61, %v1725_v13  ;;  %v1755_v16 = vsel %vm1424_vm2, %v1749_v12, -inf }
 0x29a   : > { %1759 = vmax.xlane.f32.xlu1 %v1758_v15  ;;  %1756 = vmax.xlane.f32.xlu0 %v1755_v16  ;;  %v4794_v17 = vpop.f32.mrf.mxu1 }
 0x29b   : > { %v1751_v18 = vadd.f32 %v5595_v31, %v1741_v14 }
 0x29d   : > { %v1761_v19 = vsel %vm1424_vm2, %v1751_v18, -inf }
 0x29e   : > { %1762 = vmax.xlane.f32.xlu0 %v1761_v19 }
 0x2ab   : > { %1279 = vrot.lane.b32.xlu1 %v983_v21, %s5250_s30 }
 0x31f   : > { %v1754_v22 = vpop.xlane.xlu1 %1753 }
 0x320   : > { %v1764_v23 = vsub.f32 %v1748_v6, %v1754_v22 }
 0x322   : > { %v1768_v24 = vmul.f32 1.442695, %v1764_v23 }
 0x323   : > { %v1760_v25 = vpop.xlane.xlu1 %1759  ;;  %v1757_v26 = vpop.xlane.xlu0 %1756 }
 0x324   : > { %5051 = vpow2.f32 %v1768_v24  ;;  %v1766_v27 = vsub.f32 %v1750_v10, %v1760_v25  ;;  %v1765_v28 = vsub.f32 %v1749_v12, %v1757_v26 }
 0x326   : > { %v1772_v29 = vmul.f32 1.442695, %v1766_v27  ;;  %v1770_v30 = vmul.f32 1.442695, %v1765_v28 }
 0x327   : > { %v1763_v32 = vpop.xlane.xlu0 %1762  ;;  %v1280_v44 = vpop.permute.xlu1 %1279 }
 0x328   : > { %5053 = vpow2.f32 %v1772_v29  ;;  %v1767_v33 = vsub.f32 %v1751_v18, %v1763_v32 }
 0x329   : > { %5055 = vpow2.f32 %v1770_v30 }
 0x32a   : > { %v1774_v34 = vmul.f32 1.442695, %v1767_v33 }
 0x32c   : > { %5057 = vpow2.f32 %v1774_v34 }
 0x331   : > { %v5052_v35 = vpop.eup %5051 }
 0x332   : > { %v1776_v36 = vsel %vm1424_vm2, %v5052_v35, 0.0 }
 0x333   : > { %1777 = vadd.xlane.f32.xlu1 %v1776_v36  ;;  %v749_v36 = vld [vmem:[#allocation5 + $0x18] sm:$0xff] }
 0x335   : > { %v5674_v37 = vpop.eup %5053 }
 0x336   : > { %v5056_v38 = vpop.eup %5055  ;;  %v1782_v39 = vsel %vm1424_vm2, %v5674_v37, 0.0 }
 0x337   : > { %1783 = vadd.xlane.f32.xlu1 %v1782_v39  ;;  %v1779_v40 = vsel %vm1424_vm2, %v5056_v38, 0.0 }
 0x338   : > { %1780 = vadd.xlane.f32.xlu0 %v1779_v40 }
 0x339   : > { %v5679_v42 = vpop.eup %5057 }
 0x33a   : > { %v1785_v43 = vsel %vm1424_vm2, %v5679_v42, 0.0 }
 0x33c   : > { %1786 = vadd.xlane.f32.xlu0 %v1785_v43 }
 0x348   : > { %1285 = vrot.lane.b32.xlu1 %v983_v21, %s6185_s27  ;;  %s6230_s27 = smov 24  }
 0x352   : > { %1282 = vrot.lane.b32.xlu0 %v983_v21, %s5252_s2 }
 0x3bc   : > { %v1778_v45 = vpop.xlane.xlu1 %1777 }
 0x3bd   : > { %5059 = vrcp.f32 %v1778_v45 }
 0x3c0   : > { %v1784_v46 = vpop.xlane.xlu1 %1783 }
 0x3c1   : > { %v1781_v47 = vpop.xlane.xlu0 %1780 }
 0x3c2   : > { %5061 = vrcp.f32 %v1781_v47 }
 0x3c3   : > { %5063 = vrcp.f32 %v1784_v46 }
 0x3c4   : > { %v1286_v49 = vpop.permute.xlu1 %1285 }
 0x3c5   : > { %v1787_v50 = vpop.xlane.xlu0 %1786  ;;  %v1304_v51 = vcombine.low %v1280_v44, %v1286_v49  ;;  %v1305_v52 = vcombine.high %v1280_v44, %v1286_v49 }
 0x3c6   : > { %5065 = vrcp.f32 %v1787_v50 }
 0x3c7   : > { %v1312_v56 = vrot.slane %v1304_v51, %v5597_v41  ;;  %v1319_v57 = vrot.slane %v1305_v52, %v5597_v41 }
 0x3c9   : > { %v1283_v53 = vpop.permute.xlu0 %1282 }
 0x3ca   : > { %v1288_v54 = vcombine.low %v983_v21, %v1283_v53  ;;  %v1289_v55 = vcombine.high %v983_v21, %v1283_v53  ;;  %v5060_v19 = vpop.eup %5059 }
 0x3cb   : > { %v1792_v28 = vmul.f32 %v5060_v19, %v5052_v35 }
 0x3cc   : > { %v1296_v58 = vrot.slane %v1288_v54, %v5597_v41  ;;  %v1303_v59 = vrot.slane %v1289_v55, %v5597_v41 }
 0x3ce   : > { %v1320_v60 = vcombine.low %v1296_v58, %v1312_v56  ;;  %v1321_v62 = vcombine.high %v1296_v58, %v1312_v56  ;;  %v1336_v63 = vcombine.low %v1303_v59, %v1319_v57  ;;  %v1337_v1 = vcombine.high %v1303_v59, %v1319_v57  ;;  %v748_v59 = vld [vmem:[#allocation5 + $0x10] sm:$0xff] }
 0x3cf   : > { %v5062_v20 = vpop.eup %5061 }
 0x3d0   : > { %v1328_v2 = vrot.slane %v1320_v60, %v5599_v48  ;;  %v1335_v3 = vrot.slane %v1321_v62, %v5599_v48  ;;  %v1344_v4 = vrot.slane %v1336_v63, %v5599_v48  ;;  %v1351_v6 = vrot.slane %v1337_v1, %v5599_v48  ;;  %v5064_v25 = vpop.eup %5063  ;;  %v747_v60 = vld [vmem:[#allocation5 + $0x8] sm:$0xff] }
 0x3d1   : > { %v1793_v29 = vmul.f32 %v5062_v20, %v5056_v38  ;;  %v1794_v34 = vmul.f32 %v5064_v25, %v5674_v37 }
 0x3d2   : > { %v1356_v7 = vcombine.low %v1328_v2, %v1335_v3  ;;  %v4544_v8 = vcombine.high %v1328_v2, %v1335_v3  ;;  %v1372_v9 = vcombine.low %v1344_v4, %v1351_v6  ;;  %v4545_v10 = vcombine.high %v1344_v4, %v1351_v6 }
 0x3d3   : > { %v5066_v30 = vpop.eup %5065 }
 0x3d4   : > { %v1363_v11 = vrot.slane %v1356_v7, %v5597_v41  ;;  %v1371_v12 = vrot.slane %v4544_v8, %v5597_v41  ;;  %v1379_v13 = vrot.slane %v1372_v9, %v5597_v41  ;;  %v1387_v14 = vrot.slane %v4545_v10, %v5597_v41  ;;  %v746_v8 = vld [vmem:[#allocation5] sm:$0xff] }
 0x3d5   : > { %v1795_v35 = vmul.f32 %v5066_v30, %v5679_v42 }
 0x3d6   : > { %v1388_v15 = vcombine.low %v1363_v11, %v1371_v12  ;;  %v1404_v16 = vcombine.low %v1379_v13, %v1387_v14  ;;  %v1389_v17 = vcombine.high %v1363_v11, %v1371_v12  ;;  %v1405_v18 = vcombine.high %v1379_v13, %v1387_v14 }
 0x3d8   : > { %v1396_v21 = vrot.slane %v1388_v15, %v5599_v48  ;;  %v1412_v22 = vrot.slane %v1404_v16, %v5599_v48  ;;  %v1403_v23 = vrot.slane %v1389_v17, %v5599_v48  ;;  %v1419_v24 = vrot.slane %v1405_v18, %v5599_v48 }
 0x3da   : > { %v1420_v26 = vcombine.low %v1396_v21, %v1412_v22  ;;  %v1421_v27 = vcombine.high %v1396_v21, %v1412_v22  ;;  %v1422_v32 = vcombine.low %v1403_v23, %v1419_v24  ;;  %v1423_v33 = vcombine.high %v1403_v23, %v1419_v24 }
 0x3dc   : > { %4796 = vmatpush3.msra.mxu0 %v1420_v26  ;;  %4801 = vmatpush3.msra.mxu1 %v1421_v27 }
 0x3dd   : > { %4798 = vmatmul.mubr.msk.f32.vlgmr.msra.gmra.mxu0 %vm1424_vm2, %v1792_v28  ;;  %4803 = vmatmul.mubr.msk.f32.vlgmr.msra.gmra.mxu1 %vm1424_vm2, %v1793_v29 }
 0x3de   : > { %4805 = vmatprep.subr.mxu0 %v5248_v0  ;;  %4810 = vmatprep.subr.mxu1 %v5248_v0 }
 0x3df   : > { %4806 = vmatpush3.msra.mxu0 %v1422_v32  ;;  %4811 = vmatpush3.msra.mxu1 %v1423_v33  ;;  %v4560_v32 = vld [vmem:[%s6154_s10] ss:$0 sm:$0xff] }
 0x3e0   : > { %4807 = vmatprep.mubr.msk.f32.mxu0 %vm5249_vm0, %v5248_v0  ;;  %4812 = vmatprep.mubr.msk.f32.mxu1 %vm5249_vm0, %v5248_v0 }
 0x3e1   : > { %4808 = vmatmul.mubr.msk.f32.vlgmr.msra.gmra.mxu0 %vm1424_vm2, %v1794_v34  ;;  %4813 = vmatmul.mubr.msk.f32.vlgmr.msra.gmra.mxu1 %vm1424_vm2, %v1795_v35 }
 0x3e2   : > { %4815 = vmatprep.subr.mxu0 %v5248_v0  ;;  %4823 = vmatprep.mubr.msk.f32.mxu0 %vm5249_vm0, %v5248_v0 }
 0x3e3   : > { %4826 = vmatprep.subr.mxu1 %v5248_v0  ;;  %4834 = vmatprep.mubr.msk.f32.mxu1 %vm5249_vm0, %v5248_v0 }
 0x3e4   : > { %4816 = vmatpush3.msra.mxu0 %v749_v36 }
 0x3e5   : > { %4817 = vmatprep.subr.mxu0 %v5248_v0 }
 0x3e6   : > { %4818 = vmatpush3.msra.mxu0 %v748_v59  ;;  %v4563_v59 = vld [vmem:[%s6156_s12] ss:$0 sm:$0xff] }
 0x3e7   : > { %4819 = vmatprep.subr.mxu0 %v5248_v0 }
 0x3e8   : > { %4820 = vmatpush3.msra.mxu0 %v747_v60 }
 0x3e9   : > { %4821 = vmatprep.subr.mxu0 %v5248_v0 }
 0x3ea   : > { %4822 = vmatpush3.msra.mxu0 %v746_v8 }
 0x3eb   : > { %4837 = vmatprep.subr.mxu0 %v5248_v0 }
 0x49d   : > { %v1865_v37 = vpop.f32.mrf.mxu0  ;;  %v1938_v38 = vpop.f32.mrf.mxu1 }
 0x49f   : > { %v4799_v39 = vpop.f32.mrf.mxu0  ;;  %v4804_v40 = vpop.f32.mrf.mxu1 }
 0x4a1   : > { %v2011_v42 = vpop.f32.mrf.mxu0  ;;  %v2084_v43 = vpop.f32.mrf.mxu1 }
 0x4a2   : > { %v2088_v44 = vcombine.low %v1865_v37, %v2011_v42  ;;  %v2089_v45 = vcombine.high %v1865_v37, %v2011_v42  ;;  %v2104_v46 = vcombine.low %v1938_v38, %v2084_v43  ;;  %v2105_v47 = vcombine.high %v1938_v38, %v2084_v43 }
 0x4a3   : > { %v4809_v49 = vpop.f32.mrf.mxu0  ;;  %v4814_v50 = vpop.f32.mrf.mxu1 }
 0x4a4   : > { %v2096_v51 = vrot.slane %v2088_v44, %v5597_v41  ;;  %v2103_v52 = vrot.slane %v2089_v45, %v5597_v41  ;;  %v2112_v53 = vrot.slane %v2104_v46, %v5597_v41  ;;  %v2119_v54 = vrot.slane %v2105_v47, %v5597_v41  ;;  %v2354_v44 = vld [vmem:[#allocation7 + $0x18] sm:$0xff]  ;;  %v2353_v45 = vld [vmem:[#allocation7 + $0x10] sm:$0xff]  ;;  %v2352_v46 = vld [vmem:[#allocation7 + $0x8] sm:$0xff] }
 0x4a5   : > { %4827 = vmatpush3.msra.mxu1 %v2354_v44  ;;  %v2443_v47 = vld [vmem:[%s6159_s15 + $0x38] sm:$0xff]  ;;  %v2442_v49 = vld [vmem:[%s6159_s15 + $0x30] sm:$0xff]  ;;  %v2441_v50 = vld [vmem:[%s6159_s15 + $0x28] sm:$0xff] }
 0x4a6   : > { %v2120_v55 = vcombine.low %v2096_v51, %v2112_v53  ;;  %v2121_v56 = vcombine.high %v2096_v51, %v2112_v53  ;;  %v2136_v57 = vcombine.low %v2103_v52, %v2119_v54  ;;  %v2137_v58 = vcombine.high %v2103_v52, %v2119_v54  ;;  %4828 = vmatprep.subr.mxu1 %v5248_v0  ;;  %v2440_v51 = vld [vmem:[%s6159_s15 + $0x20] sm:$0xff]  ;;  %v2439_v52 = vld [vmem:[%s6159_s15 + $0x18] sm:$0xff] }
 0x4a7   : > { %4829 = vmatpush3.msra.mxu1 %v2353_v45 }
 0x4a8   : > { %v2128_v62 = vrot.slane %v2120_v55, %v5599_v48  ;;  %v2135_v63 = vrot.slane %v2121_v56, %v5599_v48  ;;  %v2144_v1 = vrot.slane %v2136_v57, %v5599_v48  ;;  %v2151_v2 = vrot.slane %v2137_v58, %v5599_v48  ;;  %4830 = vmatprep.subr.mxu1 %v5248_v0  ;;  %v4562_v57 = vld [vmem:[%s6155_s11] ss:$0 sm:$0xff] }
 0x4a9   : > { %4831 = vmatpush3.msra.mxu1 %v2352_v46 }
 0x4aa   : > { %v2156_v3 = vcombine.low %v2128_v62, %v2135_v63  ;;  %v4558_v4 = vcombine.high %v2128_v62, %v2135_v63  ;;  %v2172_v6 = vcombine.low %v2144_v1, %v2151_v2  ;;  %v4559_v7 = vcombine.high %v2144_v1, %v2151_v2  ;;  %4832 = vmatprep.subr.mxu1 %v5248_v0  ;;  %v2438_v63 = vld [vmem:[%s6159_s15 + $0x10] sm:$0xff]  ;;  %v2437_v1 = vld [vmem:[%s6159_s15 + $0x8] sm:$0xff]  ;;  %v2436_v2 = vld [vmem:[%s6159_s15] sm:$0xff] }
 0x4ac   : > { %v2163_v9 = vrot.slane %v2156_v3, %v5597_v41  ;;  %v2171_v10 = vrot.slane %v4558_v4, %v5597_v41  ;;  %v2179_v11 = vrot.slane %v2172_v6, %v5597_v41  ;;  %v2187_v12 = vrot.slane %v4559_v7, %v5597_v41  ;;  %v4564_v3 = vld [vmem:[%s6158_s14] ss:$0 sm:$0xff] }
 0x4ae   : > { %v2189_v13 = vcombine.high %v2163_v9, %v2171_v10  ;;  %v2205_v14 = vcombine.high %v2179_v11, %v2187_v12  ;;  %v2188_v15 = vcombine.low %v2163_v9, %v2171_v10  ;;  %v2204_v16 = vcombine.low %v2179_v11, %v2187_v12  ;;  %v4566_v9 = vld [vmem:[%s6160_s16] ss:$0 sm:$0xff] }
 0x4b0   : > { %v2203_v17 = vrot.slane %v2189_v13, %v5599_v48  ;;  %v2219_v18 = vrot.slane %v2205_v14, %v5599_v48  ;;  %v2196_v19 = vrot.slane %v2188_v15, %v5599_v48  ;;  %v2212_v20 = vrot.slane %v2204_v16, %v5599_v48 }
 0x4b2   : > { %v2222_v21 = vcombine.low %v2203_v17, %v2219_v18  ;;  %v2221_v22 = vcombine.high %v2196_v19, %v2212_v20  ;;  %v2220_v23 = vcombine.low %v2196_v19, %v2212_v20  ;;  %v2223_v24 = vcombine.high %v2203_v17, %v2219_v18  ;;  %v4573_v20 = vld [vmem:[%s6220_s29 + $0x38] sm:$0xff] }
 0x4b4   : > { %2229 = vrot.lane.b32.xlu0 %v2222_v21, %s6184_s19  ;;  %2225 = vrot.lane.b32.xlu1 %v2221_v22, %s6183_s20  ;;  %v4581_v21 = vld [vmem:[%s6224_s7 + $0x38] sm:$0xff]  ;;  %v4572_v22 = vld [vmem:[%s6220_s29 + $0x30] sm:$0xff]  ;;  %s6227_s20 = smov 104   ;;  %s4639_s19 = sshll.u32 %s5391_s3, 7 }
 0x4b8   : > { %2233 = vrot.lane.b32.xlu1 %v2223_v24, %s6182_s4  ;;  %v4571_v24 = vld [vmem:[%s6220_s29 + $0x28] sm:$0xff]  ;;  %s5173_s4 = scalar_lea.vmem %s4416_s1, 128 }
 0x4b9   : > { %p5174_p0 = scmp.ne.s32.totalorder %s4416_s1, %s5173_s4 }
 0x4bb   : > { %p5175_p2 = pnand %p5174_p0, %p6235_p1 }
 0x4bd   : > { %p5176_p6 = pneg %p5175_p2 }
 0x526   : > { %v2226_v25 = vpop.permute.xlu1 %2225  ;;  %v2230_v26 = vpop.permute.xlu0 %2229 }
 0x527   : > { %v2236_v27 = vsel %vm1424_vm2, %v2220_v23, %v2226_v25  ;;  %v4580_v23 = vld [vmem:[%s6224_s7 + $0x30] sm:$0xff]  ;;  %v4579_v25 = vld [vmem:[%s6224_s7 + $0x28] sm:$0xff] }
 0x528   : > { %v2238_v29 = vsel %vm2237_vm3, %v2236_v27, %v2230_v26  ;;  %v4570_v26 = vld [vmem:[%s6220_s29 + $0x20] sm:$0xff] }
 0x529   : > { %v4578_v27 = vld [vmem:[%s6224_s7 + $0x20] sm:$0xff] }
 0x52a   : > { %v2234_v28 = vpop.permute.xlu1 %2233 }
 0x52b   : > { %v2240_v30 = vsel %vm2239_vm4, %v2238_v29, %v2234_v28 }
 0x52c   : > { %4824 = vmatmul.mubr.msk.f32.vlgmr.msra.gmra.mxu0 %vm760_vm1, %v2240_v30 }
 0x52d   : > { %4853 = vmatprep.mubr.msk.f32.mxu0 %vm5249_vm0, %v5248_v0  ;;  %4838 = vmatpush3.msra.mxu0 %v2443_v47 }
 0x52e   : > { %4839 = vmatprep.subr.mxu0 %v5248_v0 }
 0x52f   : > { %4840 = vmatpush3.msra.mxu0 %v2442_v49  ;;  %v4588_v49 = vld [vmem:[%s6223_s6 + $0x1] ss:$0 sm:$0xff]  ;;  %s6234_s6 = sld [smem:[#allocation30_spill]] }
 0x530   : > { %4841 = vmatprep.subr.mxu0 %v5248_v0 }
 0x531   : > { %4842 = vmatpush3.msra.mxu0 %v2441_v50 }
 0x532   : > { %4843 = vmatprep.subr.mxu0 %v5248_v0 }
 0x533   : > { %4844 = vmatpush3.msra.mxu0 %v2440_v51 }
 0x534   : > { %4845 = vmatprep.subr.mxu0 %v5248_v0 }
 0x535   : > { %4846 = vmatpush3.msra.mxu0 %v2439_v52  ;;  %s4413_s7 = scalar_lea.hbm %s6234_s6, %s4639_s19 }
 0x536   : > { %4847 = vmatprep.subr.mxu0 %v5248_v0 }
 0x537   : > { %4848 = vmatpush3.msra.mxu0 %v2438_v63 }
 0x538   : > { %4849 = vmatprep.subr.mxu0 %v5248_v0 }
 0x539   : > { %4850 = vmatpush3.msra.mxu0 %v2437_v1 }
 0x53a   : > { %4851 = vmatprep.subr.mxu0 %v5248_v0 }
 0x53b   : > { %4852 = vmatpush3.msra.mxu0 %v2436_v2 }
 0x53c   : > { %4878 = vmatprep.subr.mxu0 %v5248_v0 }
 0x5ec   : > { %v2316_v33 = vpop.f32.mrf.mxu0 }
 0x5ed   : > { %v2317_v34 = vadd.f32 %v4560_v32, %v2316_v33  ;;  %v4568_v33 = vld [vmem:[%s6161_s17] ss:$0 sm:$0xff] }
 0x5ee   : > { %v4825_v35 = vpop.f32.mrf.mxu0 }
 0x5ef   : > { %v2320_v36 = vadd.f32 %v2317_v34, %v5522_v5  ;;  %v2351_v5 = vld [vmem:[#allocation7] sm:$0xff]  ;;  %v4569_v35 = vld [vmem:[%s6162_s18] ss:$0 sm:$0xff] }
 0x5f0   : > { %4833 = vmatpush3.msra.mxu1 %v2351_v5 }
 0x5f1   : > { %v2323_v37 = vsel %vm760_vm1, %v2320_v36, 0.0  ;;  %4856 = vmatprep.subr.mxu1 %v5248_v0 }
 0x5f2   : > { %2324 = vadd.xlane.f32.xlu0 %v2323_v37 }
 0x67b   : > { %v2325_v38 = vpop.xlane.xlu0 %2324 }
 0x67c   : > { %v2327_v39 = vmul.f32 0.03125, %v2325_v38  ;;  %v4577_v38 = vld [vmem:[%s6221_s23 + $0x38] sm:$0xff] }
 0x67e   : > { %v2328_v40 = vsub.f32 %v2320_v36, %v2327_v39  ;;  %v4576_v39 = vld [vmem:[%s6221_s23 + $0x30] sm:$0xff] }
 0x680   : > { %v2329_v42 = vmul.f32 %v2328_v40, %v2328_v40 }
 0x682   : > { %v2330_v43 = vsel %vm760_vm1, %v2329_v42, 0.0  ;;  %v4574_v42 = vld [vmem:[%s6221_s23 + $0x20] sm:$0xff] }
 0x683   : > { %2331 = vadd.xlane.f32.xlu1 %v2330_v43  ;;  %v4586_v43 = vld [vmem:[%s6222_s28 + $0x1] ss:$0 sm:$0xff] }
 0x70c   : > { %v2332_v53 = vpop.xlane.xlu1 %2331 }
 0x70d   : > { %v2333_v54 = vmul.f32 0.03125, %v2332_v53 }
 0x70f   : > { %v2334_v55 = vadd.f32 1e-05, %v2333_v54 }
 0x711   : > { %5067 = vrsqrt.f32 %v2334_v55 }
 0x71e   : > { %v5068_v56 = vpop.eup %5067 }
 0x71f   : > { %v2336_v58 = vmul.f32 %v5068_v56, %v2328_v40  ;;  %v4575_v40 = vld [vmem:[%s6221_s23 + $0x28] sm:$0xff] }
 0x721   : > { %v2343_v60 = vmul.f32 %v4562_v57, %v2336_v58 }
 0x723   : > { %v2350_v62 = vadd.f32 %v4563_v59, %v2343_v60 }
 0x725   : > { %4835 = vmatmul.mubr.msk.f32.vlgmr.msra.gmra.mxu1 %vm760_vm1, %v2350_v62 }
 0x726   : > { %4864 = vmatprep.mubr.msk.f32.mxu1 %vm5249_vm0, %v5248_v0  ;;  %4857 = vmatpush3.msra.mxu1 %v4573_v20 }
 0x727   : > { %4858 = vmatprep.subr.mxu1 %v5248_v0 }
 0x728   : > { %4859 = vmatpush3.msra.mxu1 %v4572_v22 }
 0x729   : > { %4860 = vmatprep.subr.mxu1 %v5248_v0 }
 0x72a   : > { %4861 = vmatpush3.msra.mxu1 %v4571_v24 }
 0x72b   : > { %4862 = vmatprep.subr.mxu1 %v5248_v0 }
 0x72c   : > { %4863 = vmatpush3.msra.mxu1 %v4570_v26 }
 0x72d   : > { %4867 = vmatprep.subr.mxu1 %v5248_v0 }
 0x7e5   : > { %v2431_v4 = vpop.f32.mrf.mxu1 }
 0x7e6   : > { %v2432_v6 = vadd.f32 %v4564_v3, %v2431_v4 }
 0x7e7   : > { %v4836_v7 = vpop.f32.mrf.mxu1 }
 0x7e8   : > { %v2435_v8 = vmax.f32 %v2432_v6, 0.0 }
 0x7ea   : > { %4854 = vmatmul.mubr.msk.f32.vlgmr.msra.gmra.mxu0 %vm2451_vm5, %v2435_v8 }
 0x7eb   : > { %4886 = vmatprep.mubr.msk.f32.mxu0 %vm5249_vm0, %v5248_v0  ;;  %4879 = vmatpush3.msra.mxu0 %v4581_v21 }
 0x7ec   : > { %4880 = vmatprep.subr.mxu0 %v5248_v0 }
 0x7ed   : > { %4881 = vmatpush3.msra.mxu0 %v4580_v23 }
 0x7ee   : > { %4882 = vmatprep.subr.mxu0 %v5248_v0 }
 0x7ef   : > { %4883 = vmatpush3.msra.mxu0 %v4579_v25 }
 0x7f0   : > { %4884 = vmatprep.subr.mxu0 %v5248_v0 }
 0x7f1   : > { %4885 = vmatpush3.msra.mxu0 %v4578_v27 }
 0x7f2   : > { %4899 = vmatprep.subr.mxu0 %v5248_v0 }
 0x8aa   : > { %v2521_v10 = vpop.f32.mrf.mxu0 }
 0x8ab   : > { %v2522_v11 = vadd.f32 %v4566_v9, %v2521_v10 }
 0x8ac   : > { %v4855_v12 = vpop.f32.mrf.mxu0 }
 0x8ad   : > { %v2525_v13 = vadd.f32 %v2522_v11, %v2350_v62 }
 0x8af   : > { %v2528_v14 = vsel %vm760_vm1, %v2525_v13, 0.0 }
 0x8b0   : > { %2529 = vadd.xlane.f32.xlu0 %v2528_v14 }
 0x939   : > { %v2530_v15 = vpop.xlane.xlu0 %2529 }
 0x93a   : > { %v2531_v16 = vmul.f32 0.03125, %v2530_v15 }
 0x93c   : > { %v2532_v17 = vsub.f32 %v2525_v13, %v2531_v16 }
 0x93e   : > { %v2533_v18 = vmul.f32 %v2532_v17, %v2532_v17 }
 0x940   : > { %v2534_v19 = vsel %vm760_vm1, %v2533_v18, 0.0 }
 0x941   : > { %2535 = vadd.xlane.f32.xlu0 %v2534_v19 }
 0x9ca   : > { %v2536_v28 = vpop.xlane.xlu0 %2535 }
 0x9cb   : > { %v2537_v29 = vmul.f32 0.03125, %v2536_v28 }
 0x9cd   : > { %v2538_v30 = vadd.f32 1e-05, %v2537_v29 }
 0x9cf   : > { %5069 = vrsqrt.f32 %v2538_v30 }
 0x9dc   : > { %v5070_v32 = vpop.eup %5069 }
 0x9dd   : > { %v2540_v34 = vmul.f32 %v5070_v32, %v2532_v17 }
 0x9df   : > { %v2547_v36 = vmul.f32 %v4568_v33, %v2540_v34 }
 0x9e1   : > { %v5848_v37 = vadd.f32 %v4569_v35, %v2547_v36 }
 0x9e3   : > { %4865 = vmatmul.mubr.msk.f32.vlgmr.msra.gmra.mxu1 %vm760_vm1, %v5848_v37  ;;  %4887 = vmatmul.mubr.msk.f32.vlgmr.msra.gmra.mxu0 %vm760_vm1, %v5848_v37 }
 0x9e4   : > { %4868 = vmatpush3.msra.mxu1 %v4577_v38  ;;  %4875 = vmatprep.mubr.msk.f32.mxu1 %vm5249_vm0, %v5248_v0 }
 0x9e5   : > { %4869 = vmatprep.subr.mxu1 %v5248_v0  ;;  %4901 = vmatprep.mubr.msk.f32.mxu0 %vm5249_vm0, %v5248_v0 }
 0x9e6   : > { %4870 = vmatpush3.msra.mxu1 %v4576_v39 }
 0x9e7   : > { %4871 = vmatprep.subr.mxu1 %v5248_v0 }
 0x9e8   : > { %4872 = vmatpush3.msra.mxu1 %v4575_v40 }
 0x9e9   : > { %4873 = vmatprep.subr.mxu1 %v5248_v0 }
 0x9ea   : > { %4874 = vmatpush3.msra.mxu1 %v4574_v42 }
 0x9eb   : > { %4876 = vmatmul.mubr.msk.f32.vlgmr.msra.gmra.mxu1 %vm760_vm1, %v5848_v37  ;;  %4889 = vmatprep.subr.mxu1 %v5248_v0 }
 0x9ec   : > { %4891 = vmatprep.mubr.msk.f32.mxu1 %vm5249_vm0, %v5248_v0 }
 0xaa3   : > { %v2658_v44 = vpop.f32.mrf.mxu1  ;;  %v5881_v45 = vpop.f32.mrf.mxu0 }
 0xaa4   : > { %v2659_v46 = vadd.f32 %v4586_v43, %v2658_v44 }
 0xaa5   : > { %v4866_v5 = vpop.f32.mrf.mxu1  ;;  %v4888_v47 = vpop.f32.mrf.mxu0 }
 0xaa6   : > { %2815 = vrot.lane.b32.xlu1 %v2659_v46, %s5250_s30 }
 0xaab   : > { %v2734_v50 = vpop.f32.mrf.mxu1 }
 0xaac   : > { %v2735_v51 = vadd.f32 %v4588_v49, %v2734_v50 }
 0xaad   : > { %v4877_v52 = vpop.f32.mrf.mxu1 }
 0xaae   : > { %2964 = vrot.lane.b32.xlu0 %v2735_v51, %s5252_s2  ;;  %2961 = vrot.lane.b32.xlu1 %v2735_v51, %s5250_s30 }
 0xab2   : > { %2818 = vrot.lane.b32.xlu0 %v2659_v46, %s5252_s2  ;;  %2967 = vrot.lane.b32.xlu1 %v2735_v51, %s6227_s20 }
 0xab6   : > { %2821 = vrot.lane.b32.xlu1 %v2659_v46, %s6227_s20 }
 0xb18   : > { %v2816_v53 = vpop.permute.xlu1 %2815 }
 0xb20   : > { %v2965_v54 = vpop.permute.xlu0 %2964  ;;  %v2962_v55 = vpop.permute.xlu1 %2961 }
 0xb21   : > { %v2970_v56 = vcombine.low %v2735_v51, %v2965_v54  ;;  %v2971_v57 = vcombine.high %v2735_v51, %v2965_v54 }
 0xb23   : > { %v2978_v63 = vrot.slane %v2970_v56, %v5597_v41  ;;  %v2985_v1 = vrot.slane %v2971_v57, %v5597_v41 }
 0xb24   : > { %v2968_v58 = vpop.permute.xlu1 %2967  ;;  %v2819_v59 = vpop.permute.xlu0 %2818 }
 0xb25   : > { %v2986_v60 = vcombine.low %v2962_v55, %v2968_v58  ;;  %v2987_v62 = vcombine.high %v2962_v55, %v2968_v58  ;;  %v2824_v4 = vcombine.low %v2659_v46, %v2819_v59  ;;  %v2825_v6 = vcombine.high %v2659_v46, %v2819_v59 }
 0xb27   : > { %v2994_v2 = vrot.slane %v2986_v60, %v5597_v41  ;;  %v3001_v3 = vrot.slane %v2987_v62, %v5597_v41  ;;  %v2832_v18 = vrot.slane %v2824_v4, %v5597_v41  ;;  %v2839_v19 = vrot.slane %v2825_v6, %v5597_v41 }
 0xb28   : > { %v2822_v7 = vpop.permute.xlu1 %2821 }
 0xb29   : > { %v3002_v8 = vcombine.low %v2978_v63, %v2994_v2  ;;  %v3003_v9 = vcombine.high %v2978_v63, %v2994_v2  ;;  %v3018_v10 = vcombine.low %v2985_v1, %v3001_v3  ;;  %v3019_v11 = vcombine.high %v2985_v1, %v3001_v3 }
 0xb2a   : > { %v2840_v12 = vcombine.low %v2816_v53, %v2822_v7  ;;  %v2841_v13 = vcombine.high %v2816_v53, %v2822_v7 }
 0xb2b   : > { %v3010_v14 = vrot.slane %v3002_v8, %v5599_v48  ;;  %v3017_v15 = vrot.slane %v3003_v9, %v5599_v48  ;;  %v3026_v16 = vrot.slane %v3018_v10, %v5599_v48  ;;  %v3033_v17 = vrot.slane %v3019_v11, %v5599_v48 }
 0xb2c   : > { %v2848_v20 = vrot.slane %v2840_v12, %v5597_v41  ;;  %v2855_v21 = vrot.slane %v2841_v13, %v5597_v41 }
 0xb2d   : > { %v3038_v22 = vcombine.low %v3010_v14, %v3017_v15  ;;  %v4594_v23 = vcombine.high %v3010_v14, %v3017_v15  ;;  %v3054_v24 = vcombine.low %v3026_v16, %v3033_v17  ;;  %v4595_v25 = vcombine.high %v3026_v16, %v3033_v17 }
 0xb2e   : > { %v2856_v26 = vcombine.low %v2832_v18, %v2848_v20  ;;  %v2857_v27 = vcombine.high %v2832_v18, %v2848_v20  ;;  %v2872_v28 = vcombine.low %v2839_v19, %v2855_v21  ;;  %v2873_v29 = vcombine.high %v2839_v19, %v2855_v21 }
 0xb2f   : > { %v3045_v30 = vrot.slane %v3038_v22, %v5597_v41  ;;  %v3053_v32 = vrot.slane %v4594_v23, %v5597_v41  ;;  %v3061_v33 = vrot.slane %v3054_v24, %v5597_v41  ;;  %v3069_v34 = vrot.slane %v4595_v25, %v5597_v41 }
 0xb30   : > { %v2864_v35 = vrot.slane %v2856_v26, %v5599_v48  ;;  %v2871_v36 = vrot.slane %v2857_v27, %v5599_v48  ;;  %v2880_v38 = vrot.slane %v2872_v28, %v5599_v48  ;;  %v2887_v39 = vrot.slane %v2873_v29, %v5599_v48 }
 0xb31   : > { %v3070_v40 = vcombine.low %v3045_v30, %v3053_v32  ;;  %v3071_v42 = vcombine.high %v3045_v30, %v3053_v32  ;;  %v3086_v43 = vcombine.low %v3061_v33, %v3069_v34  ;;  %v3087_v44 = vcombine.high %v3061_v33, %v3069_v34  ;;  %v4590_v34 = vld [vmem:[%s6152_s8 + $0x1] ss:$0 sm:$0xff] }
 0xb32   : > { %v2892_v46 = vcombine.low %v2864_v35, %v2871_v36  ;;  %v4592_v5 = vcombine.high %v2864_v35, %v2871_v36  ;;  %v2908_v47 = vcombine.low %v2880_v38, %v2887_v39  ;;  %v4593_v49 = vcombine.high %v2880_v38, %v2887_v39 }
 0xb33   : > { %v3078_v50 = vrot.slane %v3070_v40, %v5599_v48  ;;  %v3094_v51 = vrot.slane %v3086_v43, %v5599_v48  ;;  %v3085_v52 = vrot.slane %v3071_v42, %v5599_v48  ;;  %v3101_v53 = vrot.slane %v3087_v44, %v5599_v48 }
 0xb34   : > { %v2899_v54 = vrot.slane %v2892_v46, %v5597_v41  ;;  %v2907_v55 = vrot.slane %v4592_v5, %v5597_v41  ;;  %v2915_v56 = vrot.slane %v2908_v47, %v5597_v41  ;;  %v2923_v57 = vrot.slane %v4593_v49, %v5597_v41 }
 0xb35   : > { %v3102_v58 = vcombine.low %v3078_v50, %v3094_v51  ;;  %v3104_v59 = vcombine.low %v3085_v52, %v3101_v53  ;;  %v3103_v9 = vcombine.high %v3078_v50, %v3094_v51  ;;  %v3105_v11 = vcombine.high %v3085_v52, %v3101_v53 }
 0xb36   : > { %v2924_v60 = vcombine.low %v2899_v54, %v2907_v55  ;;  %v2925_v62 = vcombine.high %v2899_v54, %v2907_v55  ;;  %v2940_v63 = vcombine.low %v2915_v56, %v2923_v57  ;;  %v2941_v1 = vcombine.high %v2915_v56, %v2923_v57 }
 0xb37   : > { %4890 = vmatpush3.xpose.msk.msra.mxu1 %vm1424_vm2, %v3102_v58  ;;  %4900 = vmatpush3.xpose.msk.msra.mxu0 %vm1424_vm2, %v3104_v59  ;;  %v2811_v35 = vadd.f32 %v4590_v34, %v5881_v45 }
 0xb38   : > { %4894 = vmatprep.subr.mxu1 %v5248_v0  ;;  %v2932_v2 = vrot.slane %v2924_v60, %v5599_v48  ;;  %v2948_v3 = vrot.slane %v2940_v63, %v5599_v48  ;;  %v2939_v4 = vrot.slane %v2925_v62, %v5599_v48  ;;  %v2955_v6 = vrot.slane %v2941_v1, %v5599_v48 }
 0xb39   : > { %4909 = vmatprep.subr.mxu0 %v5248_v0 }
 0xb3a   : > { %v2956_v7 = vcombine.low %v2932_v2, %v2948_v3  ;;  %v2958_v8 = vcombine.low %v2939_v4, %v2955_v6  ;;  %v2957_v10 = vcombine.high %v2932_v2, %v2948_v3  ;;  %v2959_v12 = vcombine.high %v2939_v4, %v2955_v6 }
 0xb3c   : > { %4892 = vmatmul.mubr.msk.f32.vlgmr.msra.gmra.mxu1 %vm1424_vm2, %v2956_v7  ;;  %4902 = vmatmul.mubr.msk.f32.vlgmr.msra.gmra.mxu0 %vm1424_vm2, %v2958_v8 }
 0xb3d   : > { %4895 = vmatpush3.xpose.msk.msra.mxu1 %vm1424_vm2, %v3103_v9  ;;  %4896 = vmatprep.mubr.msk.f32.mxu1 %vm5249_vm0, %v5248_v0 }
 0xb3e   : > { %4904 = vmatprep.subr.mxu1 %v5248_v0  ;;  %4911 = vmatprep.mubr.msk.f32.mxu0 %vm5249_vm0, %v5248_v0 }
 0xb40   : > { %4897 = vmatmul.mubr.msk.f32.vlgmr.msra.gmra.mxu1 %vm1424_vm2, %v2957_v10 }
 0xb41   : > { %4905 = vmatpush3.xpose.msk.msra.mxu1 %vm1424_vm2, %v3105_v11  ;;  %4906 = vmatprep.mubr.msk.f32.mxu1 %vm5249_vm0, %v5248_v0 }
 0xb42   : > { %4914 = vmatprep.subr.mxu1 %v5248_v0 }
 0xb44   : > { %4907 = vmatmul.mubr.msk.f32.vlgmr.msra.gmra.mxu1 %vm1424_vm2, %v2959_v12 }
 0xb45   : > { %4916 = vmatprep.mubr.msk.f32.mxu1 %vm5249_vm0, %v5248_v0 }
 0xbfc   : > { %v3324_v13 = vpop.f32.mrf.mxu1  ;;  %v3476_v14 = vpop.f32.mrf.mxu0 }
 0xbfd   : > { %v3556_v15 = vmul.f32 %v3324_v13, %v5655_v61  ;;  %v3558_v16 = vmul.f32 %v3476_v14, %v5655_v61 }
 0xbfe   : > { %v4893_v17 = vpop.f32.mrf.mxu1  ;;  %v4903_v18 = vpop.f32.mrf.mxu0 }
 0xbff   : > { %v3560_v19 = vadd.f32 %v3556_v15, %v5595_v31  ;;  %v3562_v23 = vadd.f32 %v3558_v16, %v5595_v31 }
 0xc00   : > { %v3400_v20 = vpop.f32.mrf.mxu1 }
 0xc01   : > { %v3557_v21 = vmul.f32 %v3400_v20, %v5655_v61  ;;  %v3564_v22 = vsel %vm1424_vm2, %v3560_v19, -inf  ;;  %v3570_v28 = vsel %vm1424_vm2, %v3562_v23, -inf }
 0xc02   : > { %3565 = vmax.xlane.f32.xlu0 %v3564_v22  ;;  %v4898_v24 = vpop.f32.mrf.mxu1 }
 0xc03   : > { %v3561_v25 = vadd.f32 %v3557_v21, %v5595_v31 }
 0xc04   : > { %v3552_v26 = vpop.f32.mrf.mxu1 }
 0xc05   : > { %v3559_v27 = vmul.f32 %v3552_v26, %v5655_v61  ;;  %v3567_v29 = vsel %vm1424_vm2, %v3561_v25, -inf }
 0xc06   : > { %3571 = vmax.xlane.f32.xlu0 %v3570_v28  ;;  %3568 = vmax.xlane.f32.xlu1 %v3567_v29  ;;  %v4908_v30 = vpop.f32.mrf.mxu1 }
 0xc07   : > { %v3563_v32 = vadd.f32 %v3559_v27, %v5595_v31 }
 0xc09   : > { %v3573_v33 = vsel %vm1424_vm2, %v3563_v32, -inf }
 0xc0a   : > { %3574 = vmax.xlane.f32.xlu0 %v3573_v33 }
 0xc17   : > { %3107 = vrot.lane.b32.xlu1 %v2811_v35, %s5250_s30  ;;  %s6228_s30 = smov 16  }
 0xc8b   : > { %v3566_v61 = vpop.xlane.xlu0 %3565 }
 0xc8c   : > { %v3576_v36 = vsub.f32 %v3560_v19, %v3566_v61 }
 0xc8e   : > { %v3580_v38 = vmul.f32 1.442695, %v3576_v36 }
 0xc8f   : > { %v3572_v39 = vpop.xlane.xlu0 %3571  ;;  %v3569_v40 = vpop.xlane.xlu1 %3568 }
 0xc90   : > { %5071 = vpow2.f32 %v3580_v38  ;;  %v3578_v42 = vsub.f32 %v3562_v23, %v3572_v39  ;;  %v3577_v43 = vsub.f32 %v3561_v25, %v3569_v40 }
 0xc92   : > { %v3584_v31 = vmul.f32 1.442695, %v3578_v42  ;;  %v3582_v44 = vmul.f32 1.442695, %v3577_v43 }
 0xc93   : > { %v3575_v46 = vpop.xlane.xlu0 %3574  ;;  %v3108_v56 = vpop.permute.xlu1 %3107 }
 0xc94   : > { %5073 = vpow2.f32 %v3584_v31  ;;  %v3579_v5 = vsub.f32 %v3563_v32, %v3575_v46 }
 0xc95   : > { %5075 = vpow2.f32 %v3582_v44 }
 0xc96   : > { %v3586_v47 = vmul.f32 1.442695, %v3579_v5 }
 0xc98   : > { %5077 = vpow2.f32 %v3586_v47  ;;  %v2574_v47 = vld [vmem:[#allocation5 + $0x38] sm:$0xff] }
 0xc9d   : > { %v5072_v49 = vpop.eup %5071 }
 0xc9e   : > { %v3588_v45 = vsel %vm1424_vm2, %v5072_v49, 0.0 }
 0xc9f   : > { %3589 = vadd.xlane.f32.xlu1 %v3588_v45 }
 0xca1   : > { %v5962_v50 = vpop.eup %5073 }
 0xca2   : > { %v5076_v51 = vpop.eup %5075  ;;  %v3594_v52 = vsel %vm1424_vm2, %v5962_v50, 0.0 }
 0xca3   : > { %3595 = vadd.xlane.f32.xlu1 %v3594_v52  ;;  %v3591_v53 = vsel %vm1424_vm2, %v5076_v51, 0.0 }
 0xca4   : > { %3592 = vadd.xlane.f32.xlu0 %v3591_v53 }
 0xca5   : > { %v5967_v54 = vpop.eup %5077 }
 0xca6   : > { %v3597_v55 = vsel %vm1424_vm2, %v5967_v54, 0.0 }
 0xca8   : > { %3598 = vadd.xlane.f32.xlu0 %v3597_v55 }
 0xcb4   : > { %3113 = vrot.lane.b32.xlu1 %v2811_v35, %s6227_s20  ;;  %s4402_s20 = scalar_lea.sflag [#allocation4], %s5488_s26 }
 0xcbe   : > { %3110 = vrot.lane.b32.xlu0 %v2811_v35, %s5252_s2  ;;  %s6229_s2 = smov 8  }
 0xd28   : > { %v3590_v57 = vpop.xlane.xlu1 %3589 }
 0xd29   : > { %5079 = vrcp.f32 %v3590_v57 }
 0xd2c   : > { %v3596_v58 = vpop.xlane.xlu1 %3595 }
 0xd2d   : > { %v3593_v59 = vpop.xlane.xlu0 %3592 }
 0xd2e   : > { %5081 = vrcp.f32 %v3593_v59 }
 0xd2f   : > { %5083 = vrcp.f32 %v3596_v58 }
 0xd30   : > { %v3114_v60 = vpop.permute.xlu1 %3113 }
 0xd31   : > { %v3599_v62 = vpop.xlane.xlu0 %3598  ;;  %v3132_v63 = vcombine.low %v3108_v56, %v3114_v60  ;;  %v3133_v1 = vcombine.high %v3108_v56, %v3114_v60 }
 0xd32   : > { %5085 = vrcp.f32 %v3599_v62 }
 0xd33   : > { %v3140_v6 = vrot.slane %v3132_v63, %v5597_v41  ;;  %v3147_v7 = vrot.slane %v3133_v1, %v5597_v41 }
 0xd35   : > { %v3111_v2 = vpop.permute.xlu0 %3110 }
 0xd36   : > { %v3116_v3 = vcombine.low %v2811_v35, %v3111_v2  ;;  %v3117_v4 = vcombine.high %v2811_v35, %v3111_v2  ;;  %v5080_v30 = vpop.eup %5079 }
 0xd37   : > { %v3604_v40 = vmul.f32 %v5080_v30, %v5072_v49 }
 0xd38   : > { %v3124_v8 = vrot.slane %v3116_v3, %v5597_v41  ;;  %v3131_v9 = vrot.slane %v3117_v4, %v5597_v41 }
 0xd3a   : > { %v3148_v10 = vcombine.low %v3124_v8, %v3140_v6  ;;  %v3149_v11 = vcombine.high %v3124_v8, %v3140_v6  ;;  %v3164_v12 = vcombine.low %v3131_v9, %v3147_v7  ;;  %v3165_v13 = vcombine.high %v3131_v9, %v3147_v7  ;;  %v2573_v7 = vld [vmem:[#allocation5 + $0x30] sm:$0xff]  ;;  %v2572_v8 = vld [vmem:[#allocation5 + $0x28] sm:$0xff] }
 0xd3b   : > { %v5082_v32 = vpop.eup %5081 }
 0xd3c   : > { %v3156_v14 = vrot.slane %v3148_v10, %v5599_v48  ;;  %v3163_v15 = vrot.slane %v3149_v11, %v5599_v48  ;;  %v3172_v16 = vrot.slane %v3164_v12, %v5599_v48  ;;  %v3179_v17 = vrot.slane %v3165_v13, %v5599_v48  ;;  %v5084_v36 = vpop.eup %5083 }
 0xd3d   : > { %v3605_v42 = vmul.f32 %v5082_v32, %v5076_v51  ;;  %v3606_v46 = vmul.f32 %v5084_v36, %v5962_v50 }
 0xd3e   : > { %v3184_v18 = vcombine.low %v3156_v14, %v3163_v15  ;;  %v4596_v19 = vcombine.high %v3156_v14, %v3163_v15  ;;  %v3200_v20 = vcombine.low %v3172_v16, %v3179_v17  ;;  %v4597_v21 = vcombine.high %v3172_v16, %v3179_v17  ;;  %v2571_v17 = vld [vmem:[#allocation5 + $0x20] sm:$0xff] }
 0xd3f   : > { %v5086_v43 = vpop.eup %5085 }
 0xd40   : > { %v3191_v22 = vrot.slane %v3184_v18, %v5597_v41  ;;  %v3199_v23 = vrot.slane %v4596_v19, %v5597_v41  ;;  %v3207_v24 = vrot.slane %v3200_v20, %v5597_v41  ;;  %v3215_v25 = vrot.slane %v4597_v21, %v5597_v41 }
 0xd41   : > { %v3607_v5 = vmul.f32 %v5086_v43, %v5967_v54 }
 0xd42   : > { %v3216_v26 = vcombine.low %v3191_v22, %v3199_v23  ;;  %v3232_v27 = vcombine.low %v3207_v24, %v3215_v25  ;;  %v3217_v28 = vcombine.high %v3191_v22, %v3199_v23  ;;  %v3233_v29 = vcombine.high %v3207_v24, %v3215_v25 }
 0xd44   : > { %v3224_v33 = vrot.slane %v3216_v26, %v5599_v48  ;;  %v3240_v34 = vrot.slane %v3232_v27, %v5599_v48  ;;  %v3231_v35 = vrot.slane %v3217_v28, %v5599_v48  ;;  %v3247_v61 = vrot.slane %v3233_v29, %v5599_v48 }
 0xd46   : > { %v3248_v38 = vcombine.low %v3224_v33, %v3240_v34  ;;  %v3249_v39 = vcombine.high %v3224_v33, %v3240_v34  ;;  %v3250_v31 = vcombine.low %v3231_v35, %v3247_v61  ;;  %v3251_v44 = vcombine.high %v3231_v35, %v3247_v61 }
 0xd48   : > { %4910 = vmatpush3.msra.mxu0 %v3248_v38  ;;  %4915 = vmatpush3.msra.mxu1 %v3249_v39 }
 0xd49   : > { %4912 = vmatmul.mubr.msk.f32.vlgmr.msra.gmra.mxu0 %vm1424_vm2, %v3604_v40  ;;  %4917 = vmatmul.mubr.msk.f32.vlgmr.msra.gmra.mxu1 %vm1424_vm2, %v3605_v42 }
 0xd4a   : > { %4919 = vmatprep.subr.mxu0 %v5248_v0  ;;  %4924 = vmatprep.subr.mxu1 %v5248_v0 }
 0xd4b   : > { %4920 = vmatpush3.msra.mxu0 %v3250_v31  ;;  %4925 = vmatpush3.msra.mxu1 %v3251_v44 }
 0xd4c   : > { %4921 = vmatprep.mubr.msk.f32.mxu0 %vm5249_vm0, %v5248_v0  ;;  %4926 = vmatprep.mubr.msk.f32.mxu1 %vm5249_vm0, %v5248_v0 }
 0xd4d   : > { %4922 = vmatmul.mubr.msk.f32.vlgmr.msra.gmra.mxu0 %vm1424_vm2, %v3606_v46  ;;  %4927 = vmatmul.mubr.msk.f32.vlgmr.msra.gmra.mxu1 %vm1424_vm2, %v3607_v5 }
 0xd4e   : > { %4929 = vmatprep.subr.mxu0 %v5248_v0  ;;  %4937 = vmatprep.mubr.msk.f32.mxu0 %vm5249_vm0, %v5248_v0 }
 0xd4f   : > { %4940 = vmatprep.subr.mxu1 %v5248_v0  ;;  %4948 = vmatprep.mubr.msk.f32.mxu1 %vm5249_vm0, %v5248_v0 }
 0xd50   : > { %4930 = vmatpush3.msra.mxu0 %v2574_v47 }
 0xd51   : > { %4931 = vmatprep.subr.mxu0 %v5248_v0 }
 0xd52   : > { %4932 = vmatpush3.msra.mxu0 %v2573_v7  ;;  %v4622_v7 = vld [vmem:[%s6159_s15 + $0x48] sm:$0xff] }
 0xd53   : > { %4933 = vmatprep.subr.mxu0 %v5248_v0 }
 0xd54   : > { %4934 = vmatpush3.msra.mxu0 %v2572_v8  ;;  %v4621_v8 = vld [vmem:[%s6159_s15 + $0x40] sm:$0xff] }
 0xd55   : > { %4935 = vmatprep.subr.mxu0 %v5248_v0 }
 0xd56   : > { %4936 = vmatpush3.msra.mxu0 %v2571_v17 }
 0xd57   : > { %4951 = vmatprep.subr.mxu0 %v5248_v0 }
 0xe09   : > { %v3677_v49 = vpop.f32.mrf.mxu0  ;;  %v3750_v45 = vpop.f32.mrf.mxu1 }
 0xe0b   : > { %v4913_v50 = vpop.f32.mrf.mxu0  ;;  %v4918_v51 = vpop.f32.mrf.mxu1 }
 0xe0c   : > { %v4166_v50 = vld [vmem:[#allocation7 + $0x38] sm:$0xff]  ;;  %v4165_v51 = vld [vmem:[#allocation7 + $0x30] sm:$0xff] }
 0xe0d   : > { %v3823_v52 = vpop.f32.mrf.mxu0  ;;  %v3896_v53 = vpop.f32.mrf.mxu1  ;;  %4941 = vmatpush3.msra.mxu1 %v4166_v50 }
 0xe0e   : > { %v3900_v54 = vcombine.low %v3677_v49, %v3823_v52  ;;  %v3901_v55 = vcombine.high %v3677_v49, %v3823_v52  ;;  %v3916_v56 = vcombine.low %v3750_v45, %v3896_v53  ;;  %v3917_v57 = vcombine.high %v3750_v45, %v3896_v53  ;;  %4942 = vmatprep.subr.mxu1 %v5248_v0  ;;  %v4164_v52 = vld [vmem:[#allocation7 + $0x28] sm:$0xff] }
 0xe0f   : > { %v4923_v58 = vpop.f32.mrf.mxu0  ;;  %v4928_v59 = vpop.f32.mrf.mxu1  ;;  %4943 = vmatpush3.msra.mxu1 %v4165_v51  ;;  %v4628_v53 = vld [vmem:[%s6159_s15 + $0x78] sm:$0xff] }
 0xe10   : > { %v3908_v60 = vrot.slane %v3900_v54, %v5597_v41  ;;  %v3915_v62 = vrot.slane %v3901_v55, %v5597_v41  ;;  %v3924_v63 = vrot.slane %v3916_v56, %v5597_v41  ;;  %v3931_v1 = vrot.slane %v3917_v57, %v5597_v41  ;;  %4944 = vmatprep.subr.mxu1 %v5248_v0  ;;  %v4627_v54 = vld [vmem:[%s6159_s15 + $0x70] sm:$0xff]  ;;  %v4626_v55 = vld [vmem:[%s6159_s15 + $0x68] sm:$0xff]  ;;  %v4625_v56 = vld [vmem:[%s6159_s15 + $0x60] sm:$0xff] }
 0xe11   : > { %4945 = vmatpush3.msra.mxu1 %v4164_v52  ;;  %v4624_v57 = vld [vmem:[%s6159_s15 + $0x58] sm:$0xff] }
 0xe12   : > { %v3932_v2 = vcombine.low %v3908_v60, %v3924_v63  ;;  %v3933_v3 = vcombine.high %v3908_v60, %v3924_v63  ;;  %v3948_v4 = vcombine.low %v3915_v62, %v3931_v1  ;;  %v3949_v6 = vcombine.high %v3915_v62, %v3931_v1  ;;  %4946 = vmatprep.subr.mxu1 %v5248_v0  ;;  %v4616_v63 = vld [vmem:[%s6155_s11 + $0x1] ss:$0 sm:$0xff] }
 0xe14   : > { %v3940_v9 = vrot.slane %v3932_v2, %v5599_v48  ;;  %v3947_v10 = vrot.slane %v3933_v3, %v5599_v48  ;;  %v3956_v11 = vrot.slane %v3948_v4, %v5599_v48  ;;  %v3963_v12 = vrot.slane %v3949_v6, %v5599_v48  ;;  %v4617_v2 = vld [vmem:[%s6156_s12 + $0x1] ss:$0 sm:$0xff]  ;;  %v4623_v6 = vld [vmem:[%s6159_s15 + $0x50] sm:$0xff] }
 0xe16   : > { %v3968_v13 = vcombine.low %v3940_v9, %v3947_v10  ;;  %v4610_v14 = vcombine.high %v3940_v9, %v3947_v10  ;;  %v3984_v15 = vcombine.low %v3956_v11, %v3963_v12  ;;  %v4611_v16 = vcombine.high %v3956_v11, %v3963_v12  ;;  %v4619_v9 = vld [vmem:[%s6158_s14 + $0x1] ss:$0 sm:$0xff] }
 0xe18   : > { %v3975_v18 = vrot.slane %v3968_v13, %v5597_v41  ;;  %v3983_v19 = vrot.slane %v4610_v14, %v5597_v41  ;;  %v3991_v20 = vrot.slane %v3984_v15, %v5597_v41  ;;  %v3999_v21 = vrot.slane %v4611_v16, %v5597_v41  ;;  %v4630_v14 = vld [vmem:[%s6160_s16 + $0x1] ss:$0 sm:$0xff] }
 0xe1a   : > { %v4001_v22 = vcombine.high %v3975_v18, %v3983_v19  ;;  %v4017_v23 = vcombine.high %v3991_v20, %v3999_v21  ;;  %v4000_v24 = vcombine.low %v3975_v18, %v3983_v19  ;;  %v4016_v25 = vcombine.low %v3991_v20, %v3999_v21 }
 0xe1c   : > { %v4015_v26 = vrot.slane %v4001_v22, %v5599_v48  ;;  %v4031_v27 = vrot.slane %v4017_v23, %v5599_v48  ;;  %v4008_v28 = vrot.slane %v4000_v24, %v5599_v48  ;;  %v4024_v29 = vrot.slane %v4016_v25, %v5599_v48  ;;  %v4612_v48 = vld [vmem:[%s6154_s10 + $0x1] ss:$0 sm:$0xff] }
 0xe1e   : > { %v4034_v30 = vcombine.low %v4015_v26, %v4031_v27  ;;  %v4033_v32 = vcombine.high %v4008_v28, %v4024_v29  ;;  %v4032_v33 = vcombine.low %v4008_v28, %v4024_v29  ;;  %v4035_v41 = vcombine.high %v4015_v26, %v4031_v27  ;;  %v4634_v28 = vld [vmem:[%s6161_s17 + $0x1] ss:$0 sm:$0xff] }
 0xe20   : > { %4041 = vrot.lane.b32.xlu0 %v4034_v30, %s6228_s30  ;;  %4037 = vrot.lane.b32.xlu1 %v4033_v32, %s6229_s2  ;;  %v4635_v30 = vld [vmem:[%s6162_s18 + $0x1] ss:$0 sm:$0xff] }
 0xe24   : > { %4045 = vrot.lane.b32.xlu1 %v4035_v41, %s6230_s27  ;;  %s6232_s27 = sld [smem:[#allocation29_spill]] }
 0xe92   : > { %v4038_v34 = vpop.permute.xlu1 %4037  ;;  %v4042_v35 = vpop.permute.xlu0 %4041 }
 0xe93   : > { %v4048_v61 = vsel %vm1424_vm2, %v4032_v33, %v4038_v34 }
 0xe94   : > { %v4049_v38 = vsel %vm2237_vm3, %v4048_v61, %v4042_v35 }
 0xe96   : > { %v4046_v36 = vpop.permute.xlu1 %4045 }
 0xe97   : > { %v4050_v39 = vsel %vm2239_vm4, %v4049_v38, %v4046_v36 }
 0xe98   : > { %4938 = vmatmul.mubr.msk.f32.vlgmr.msra.gmra.mxu0 %vm760_vm1, %v4050_v39 }
 0xe99   : > { %4967 = vmatprep.mubr.msk.f32.mxu0 %vm5249_vm0, %v5248_v0  ;;  %4952 = vmatpush3.msra.mxu0 %v4628_v53 }
 0xe9a   : > { %4953 = vmatprep.subr.mxu0 %v5248_v0 }
 0xe9b   : > { %4954 = vmatpush3.msra.mxu0 %v4627_v54 }
 0xe9c   : > { %4955 = vmatprep.subr.mxu0 %v5248_v0 }
 0xe9d   : > { %4956 = vmatpush3.msra.mxu0 %v4626_v55 }
 0xe9e   : > { %4957 = vmatprep.subr.mxu0 %v5248_v0 }
 0xe9f   : > { %4958 = vmatpush3.msra.mxu0 %v4625_v56 }
 0xea0   : > { %4959 = vmatprep.subr.mxu0 %v5248_v0 }
 0xea1   : > { %4960 = vmatpush3.msra.mxu0 %v4624_v57 }
 0xea2   : > { %4961 = vmatprep.subr.mxu0 %v5248_v0 }
 0xea3   : > { %4962 = vmatpush3.msra.mxu0 %v4623_v6 }
 0xea4   : > { %4963 = vmatprep.subr.mxu0 %v5248_v0 }
 0xea5   : > { %4964 = vmatpush3.msra.mxu0 %v4622_v7 }
 0xea6   : > { %4965 = vmatprep.subr.mxu0 %v5248_v0 }
 0xea7   : > { %4966 = vmatpush3.msra.mxu0 %v4621_v8 }
 0xf58   : > { %v4126_v40 = vpop.f32.mrf.mxu0 }
 0xf59   : > { %v4127_v42 = vadd.f32 %v4612_v48, %v4126_v40 }
 0xf5a   : > { %v4939_v43 = vpop.f32.mrf.mxu0 }
 0xf5b   : > { %v4130_v31 = vadd.f32 %v4127_v42, %v5848_v37  ;;  %v4163_v37 = vld [vmem:[#allocation7 + $0x20] sm:$0xff]  ;;  %v4636_v43 = vld [vmem:[%s6231_s22] ss:$0 sm:$0xff]  ;;  %s5259_s22 = smov [#allocation8]  }
 0xf5c   : > { %4947 = vmatpush3.msra.mxu1 %v4163_v37  ;;  %s5177_s3 = sshll.u32 %s5259_s22, 4  ;;  %s5178_s3 = int_to_ptr.vmem [resolvable:$false] %s5177_s3 }
 0xf5d   : > { %v4135_v44 = vsel %vm760_vm1, %v4130_v31, 0.0  ;;  %s5179_s30 = scalar_lea.vmem %s5178_s3, 256  ;;  %p5180_p12 = scmp.lt.s32.totalorder %s4416_s1, %s5178_s3 }
 0xf5e   : > { %4136 = vadd.xlane.f32.xlu0 %v4135_v44  ;;  %v4637_v44 = vld [vmem:[%s6232_s27] ss:$0 sm:$0xff]  ;;  %p5181_p7 = scmp.lt.s32.totalorder %s5179_s30, %s5173_s4 }
 0xf60   : > { %p5182_p9 = por %p5181_p7, %p5180_p12 }
 0xf62   : > { %p5183_p13 = pnand %p5182_p9, %p5176_p6 }
 0xfe7   : > { %v4137_v46 = vpop.xlane.xlu0 %4136 }
 0xfe8   : > { %v4138_v5 = vmul.f32 0.03125, %v4137_v46 }
 0xfea   : > { %v4139_v47 = vsub.f32 %v4130_v31, %v4138_v5 }
 0xfec   : > { %v4140_v49 = vmul.f32 %v4139_v47, %v4139_v47 }
 0xfee   : > { %v4141_v45 = vsel %vm760_vm1, %v4140_v49, 0.0 }
 0xfef   : > { %4142 = vadd.xlane.f32.xlu1 %v4141_v45 }
0x1078   : > { %v4143_v58 = vpop.xlane.xlu1 %4142 }
0x1079   : > { %v4144_v59 = vmul.f32 0.03125, %v4143_v58 }
0x107b   : > { %v4145_v60 = vadd.f32 1e-05, %v4144_v59 }
0x107d   : > { %5087 = vrsqrt.f32 %v4145_v60 }
0x108a   : > { %v5088_v62 = vpop.eup %5087 }
0x108b   : > { %v4147_v1 = vmul.f32 %v5088_v62, %v4139_v47 }
0x108d   : > { %v4154_v3 = vmul.f32 %v4616_v63, %v4147_v1 }
0x108f   : > { %v4161_v4 = vadd.f32 %v4617_v2, %v4154_v3 }
0x1091   : > { %4949 = vmatmul.mubr.msk.f32.vlgmr.msra.gmra.mxu1 %vm760_vm1, %v4161_v4 }
0x1151   : > { %v4244_v10 = vpop.f32.mrf.mxu1 }
0x1152   : > { %v4245_v11 = vadd.f32 %v4619_v9, %v4244_v10 }
0x1153   : > { %v4950_v12 = vpop.f32.mrf.mxu1 }
0x1154   : > { %v4248_v13 = vmax.f32 %v4245_v11, 0.0 }
0x1156   : > { %4968 = vmatmul.mubr.msk.f32.vlgmr.msra.gmra.mxu0 %vm2451_vm5, %v4248_v13 }
0x1216   : > { %v4335_v15 = vpop.f32.mrf.mxu0 }
0x1217   : > { %v4336_v16 = vadd.f32 %v4630_v14, %v4335_v15 }
0x1218   : > { %v4969_v17 = vpop.f32.mrf.mxu0 }
0x1219   : > { %v4339_v18 = vadd.f32 %v4336_v16, %v4161_v4 }
0x121b   : > { %v4344_v0 = vsel %vm760_vm1, %v4339_v18, 0.0 }
0x121c   : > { %4345 = vadd.xlane.f32.xlu0 %v4344_v0 }
0x12a5   : > { %v4346_v19 = vpop.xlane.xlu0 %4345 }
0x12a6   : > { %v4347_v20 = vmul.f32 0.03125, %v4346_v19 }
0x12a8   : > { %v4348_v21 = vsub.f32 %v4339_v18, %v4347_v20 }
0x12aa   : > { %v4349_v22 = vmul.f32 %v4348_v21, %v4348_v21 }
0x12ac   : > { %v4350_v23 = vsel %vm760_vm1, %v4349_v22, 0.0 }
0x12ad   : > { %4351 = vadd.xlane.f32.xlu0 %v4350_v23 }
0x1336   : > { %v4352_v24 = vpop.xlane.xlu0 %4351 }
0x1337   : > { %v4353_v25 = vmul.f32 0.03125, %v4352_v24 }
0x1339   : > { %v4354_v26 = vadd.f32 1e-05, %v4353_v25 }
0x133b   : > { %5089 = vrsqrt.f32 %v4354_v26 }
0x1348   : > { %v5090_v27 = vpop.eup %5089 }
0x1349   : > { %v4356_v29 = vmul.f32 %v5090_v27, %v4348_v21 }
0x134b   : > { %v4363_v32 = vmul.f32 %v4634_v28, %v4356_v29 }
0x134d   : > { %v4370_v33 = vadd.f32 %v4635_v30, %v4363_v32 }
0x134f   : > { %v4373_v41 = vsel %vm760_vm1, %v4370_v33, 0.0 }
0x1350   : > { %4374 = vadd.xlane.f32.xlu1 %v4373_v41 }
0x13d9   : > { %v4375_v34 = vpop.xlane.xlu1 %4374 }
0x13da   : > { %v4376_v35 = vmul.f32 0.03125, %v4375_v34 }
0x13dc   : > { %v4377_v61 = vsub.f32 %v4370_v33, %v4376_v35 }
0x13de   : > { %v4378_v36 = vmul.f32 %v4377_v61, %v4377_v61 }
0x13e0   : > { %v4379_v38 = vsel %vm760_vm1, %v4378_v36, 0.0 }
0x13e1   : > { %4380 = vadd.xlane.f32.xlu0 %v4379_v38 }
0x146a   : > { %v4381_v39 = vpop.xlane.xlu0 %4380 }
0x146b   : > { %v4382_v48 = vmul.f32 0.03125, %v4381_v39 }
0x146d   : > { %v4383_v40 = vadd.f32 1e-05, %v4382_v48 }
0x146f   : > { %5091 = vrsqrt.f32 %v4383_v40 }
0x147c   : > { %v5092_v42 = vpop.eup %5091 }
0x147d   : > { %v4385_v31 = vmul.f32 %v5092_v42, %v4377_v61 }
0x147f   : > { %v4392_v46 = vmul.f32 %v4636_v43, %v4385_v31 }
0x1481   : > { %v4399_v5 = vadd.f32 %v4637_v44, %v4392_v46 }
0x1483   : > { %4400 = vst.msk [vmem:[%s722_s0] sm:$0xff] %vm760_vm1, %v4399_v5 }
0x1484   : > { %5186 = shalt.err (!%p5183_p13)
}
0x1485   : > { %s5187_s2 = scalar_lea.hbm %s4413_s7, 128  ;;  %s5191_s19 = scalar_lea.hbm %s6234_s6, 256 }
0x1486   : > { %p5188_p5 = scmp.ne.s32.totalorder %s4413_s7, %s5187_s2  ;;  %p5192_p8 = scmp.lt.s32.totalorder %s4413_s7, %s6234_s6 }
0x1487   : > { %p5193_p3 = scmp.lt.s32.totalorder %s5191_s19, %s5187_s2 }
0x1488   : > { %p5189_p10 = pnand %p5188_p5, %p6235_p1 }
0x1489   : > { %p5194_p11 = por %p5193_p3, %p5192_p8 }
0x148a   : > { %p5190_p4 = pneg %p5189_p10 }
0x148c   : > { %p5195_p0 = pnand %p5194_p11, %p5190_p4 }
0x148e   : > { %5198 = shalt.err (!%p5195_p0)
}
0x148f   : > { %4980 = dma.vmem_to_hbm [thread:$0]  (%p6235_p1), %s4416_s1, 128, %s4413_s7, %s4402_s20  }
0x1490 PF: > { %s6236_s24 = sld [smem:[#allocation12_spill]] }
0x1491   : > { %s6237_s5 = sld [smem:[#allocation15_spill]] }
0x1492   : > { %s6238_s4 = sld [smem:[#allocation14_spill]] }
0x1496   : > { %s4427_s22 = sand.u32 1, %s6236_s24  }
0x1497   : > { %p6239_p2 = scmp.ne.s32.totalorder %s6237_s5, 0  ;;  %s4428_s3 = scalar_lea.sflag [#allocation4], %s4427_s22 }
0x1498   : > { %p6240_p6 = scmp.ge.s32.totalorder %s6238_s4, 2 }
0x149a   : > { %p4994_p12 = pnand %p6240_p6, %p6239_p2 }
0x149c   : > { %p4995_p7 = pneg %p4994_p12 }
0x149e   : > { %5224 = dma.done.wait (%p4995_p7), %s4428_s3, 128  }
0x149f   : > { %5226 = vsyncadd (%p4995_p7), %s4428_s3, 4294967168  ;;  %s6241_s27 = sld [smem:[#allocation16_spill]]  ;;  %s6244_s2 = smov %s5233_s25 }
0x14a0   : > { %s6242_s30 = sld [smem:[#allocation13_spill]] }
0x14a1   : > { %s6243_s26 = sld [smem:[#allocation17_spill]] }
0x14a5   : > { %p35_p9 = scmp.ge.s32.totalorder %s6241_s27, 4  }
0x14a6   : > { %s6245_s25 = smov %s6242_s30 }
0x14a7   :  { %37 = sbr.rel (!%p35_p9) target bundleno = 20 (0x14), region = 179 }
0x14ac   :  { %4433 = vsyncpa [#allocation3], 1 }
0x14ad   :  { %4435 = vsyncpa [#allocation3 + $0x1], 1 }
0x14ae   :  { %4436 = vsyncpa [#allocation6], 1 }
0x14af   :  { %4437 = vsyncpa [#allocation4], 1 }
0x14b0   :  { %4439 = vsyncpa [#allocation4 + $0x1], 1 }

</bundles_post_ra>
